<compile_context>
chip_gen: v7x
topology: tpu7x:2x2x1
jax: 0.10.0
libtpu: 0.0.40
codegen_flags: <defaults>
</compile_context>

<pallas_src>
import jax
import jax.numpy as jnp
from jax import lax
from jax.experimental import pallas as pl
from jax.experimental.pallas import tpu as pltpu

# ---- small config (scaled-down DMelHuBERTCTCArgs) ----
N_MELS = 8          # args.n_mels
CODEBOOK = 16       # args.dmel_codebook_size
EMB_DIM = 16        # args.dmel_embedding_dim
MODEL_DIM = 128     # args.model_dim
N_HEADS = 2         # args.n_heads == args.n_kv_heads
HEAD_DIM = 64       # args.head_dim  (N_HEADS * HEAD_DIM == MODEL_DIM)
HIDDEN = 4 * MODEL_DIM
N_LAYERS = 2        # args.n_layers
VOCAB = 29          # args.vocab_size
VOCAB_PAD = 128     # lane-dense padded output width for the final projection
EPS = 1e-6          # args.rms_norm_eps
ROPE_THETA = 10000.0
NEG_INF = -1e30     # additive mask value (scores stay f32, so this is safe)


def _rmsnorm(x, w):
    var = jnp.mean(x * x, axis=-1, keepdims=True)
    return x * lax.rsqrt(var + EPS) * w


# ----------------------------------------------------------------------------
# fused forward kernel: grid=(N_LAYERS,), activations resident in VMEM scratch
# ----------------------------------------------------------------------------
def fused_forward_kernel(emb_ref, embw_ref, embb_ref, prenorm_ref,
                         segc_ref, segr_ref, cos_ref, sin_ref,
                         projw_ref, projb_ref,
                         anw_ref, fnw_ref, wqkv_ref, wo_ref, w13_ref, w2_ref,
                         logits_ref,
                         x_scr, mask_scr):
    layer = pl.program_id(0)

    # ---- layer 0: dmel embedding Linear + pre-encoder RMSNorm + mask ----
    @pl.when(layer == 0)
    def _():
        h = jnp.dot(emb_ref[...].astype(jnp.bfloat16), embw_ref[...],
                    preferred_element_type=jnp.float32) + embb_ref[...]
        x_scr[...] = _rmsnorm(h, prenorm_ref[...])
        # TODO(synk): nn.Dropout(p=0.1) is stochastic; identity (eval mode).
        # block-diagonal additive mask from per-row segment IDs (built once)
        mask_scr[...] = jnp.where(segc_ref[...] == segr_ref[...],
                                  jnp.float32(0.0), jnp.float32(NEG_INF))

    x = x_scr[...]
    S = x.shape[0]
    mask = mask_scr[...]
    cos = cos_ref[...]          # (S, HEAD_DIM) de-interleaved cos table
    sin = sin_ref[...]          # (S, HEAD_DIM) de-interleaved sin table

    # ---- self-attention (pre-norm, RoPE, block-diagonal mask) ----
    h = _rmsnorm(x, anw_ref[...]).astype(jnp.bfloat16)
    qkv = jnp.dot(h, wqkv_ref[...], preferred_element_type=jnp.float32)   # (S, 3D)
    q = qkv[:, 0:MODEL_DIM]
    k = qkv[:, MODEL_DIM:2 * MODEL_DIM]
    v = qkv[:, 2 * MODEL_DIM:3 * MODEL_DIM].astype(jnp.bfloat16)

    half = HEAD_DIM // 2

    def rope(t):   # t: (S, HEAD_DIM) in the de-interleaved (NeoX) layout
        t1 = t[:, :half]
        t2 = t[:, half:]
        rot = jnp.concatenate([-t2, t1], axis=1)
        return t * cos + rot * sin

    scale = 1.0 / (HEAD_DIM ** 0.5)
    attn = jnp.zeros((S, MODEL_DIM), jnp.float32)
    for hh in range(N_HEADS):
        sl = slice(hh * HEAD_DIM, (hh + 1) * HEAD_DIM)
        qh = rope(q[:, sl]).astype(jnp.bfloat16)
        kh = rope(k[:, sl]).astype(jnp.bfloat16)
        scores = lax.dot_general(qh, kh, (((1,), (1,)), ((), ())),
                                 preferred_element_type=jnp.float32) * scale + mask
        m = jnp.max(scores, axis=-1, keepdims=True)
        p = jnp.exp(scores - m)
        probs = (p / jnp.sum(p, axis=-1, keepdims=True)).astype(jnp.bfloat16)
        ctx = jnp.dot(probs, v[:, sl],
                      preferred_element_type=jnp.float32).astype(jnp.bfloat16)
        # per-head wo-accumulate (no head concat / relayout)
        attn = attn + jnp.dot(ctx, wo_ref[sl, :],
                              preferred_element_type=jnp.float32)
    x = x + attn

    # ---- SwiGLU FFN (pre-norm), fused w1/w3 ----
    h2 = _rmsnorm(x, fnw_ref[...]).astype(jnp.bfloat16)
    ug = jnp.dot(h2, w13_ref[...], preferred_element_type=jnp.float32)    # (S, 2H)
    u = ug[:, :HIDDEN]
    g = ug[:, HIDDEN:]
    ff_in = (u * jax.nn.sigmoid(u) * g).astype(jnp.bfloat16)
    ff = jnp.dot(ff_in, w2_ref[...], preferred_element_type=jnp.float32)
    x = x + ff
    x_scr[...] = x

    # ---- last layer: final CTC projection (lane-dense padded output) ----
    @pl.when(layer == pl.num_programs(0) - 1)
    def _():
        logits_ref[...] = (jnp.dot(x.astype(jnp.bfloat16), projw_ref[...],
                                   preferred_element_type=jnp.float32)
                           + projb_ref[...])


# ----------------------------------------------------------------------------
# one-time weight packing (hoisted out of the forward)
# ----------------------------------------------------------------------------
def _deinterleave_cols(w):
    """Permute per-head columns from interleaved pairs to [evens | odds]."""
    idx = []
    for h in range(N_HEADS):
        base = h * HEAD_DIM
        idx += [base + 2 * i for i in range(HEAD_DIM // 2)]
        idx += [base + 2 * i + 1 for i in range(HEAD_DIM // 2)]
    return w[:, jnp.asarray(idx, dtype=jnp.int32)]


def prepare_params(params):
    layers = params["layers"]
    proj_w_pad = jnp.zeros((MODEL_DIM, VOCAB_PAD), jnp.float32).at[:, :VOCAB].set(
        params["proj_w"])
    proj_b_pad = jnp.zeros((1, VOCAB_PAD), jnp.float32).at[:, :VOCAB].set(
        params["proj_b"])
    packed = {
        "codebook_emb": params["codebook_emb"].astype(jnp.float32),
        "emb_proj_w": params["emb_proj_w"].astype(jnp.bfloat16),
        "emb_proj_b": params["emb_proj_b"].astype(jnp.float32),
        "pre_norm_w": params["pre_norm_w"].astype(jnp.float32),
        "proj_w_pad": proj_w_pad.astype(jnp.bfloat16),
        "proj_b_pad": proj_b_pad,
        "anw": jnp.stack([l["attn_norm"] for l in layers]),                 # (L,1,D) f32
        "fnw": jnp.stack([l["ffn_norm"] for l in layers]),                  # (L,1,D) f32
        # de-interleave wq/wk columns so in-kernel RoPE needs no lane rotate
        "wqkv": jnp.stack([jnp.concatenate([_deinterleave_cols(l["wq"]),
                                            _deinterleave_cols(l["wk"]),
                                            l["wv"]], axis=1)
                           for l in layers]).astype(jnp.bfloat16),          # (L,D,3D)
        "wo": jnp.stack([l["wo"] for l in layers]).astype(jnp.bfloat16),    # (L,D,D)
        "w13": jnp.stack([jnp.concatenate([l["w1"], l["w3"]], axis=1)
                          for l in layers]).astype(jnp.bfloat16),           # (L,D,2H)
        "w2": jnp.stack([l["w2"] for l in layers]).astype(jnp.bfloat16),    # (L,H,D)
    }
    return packed


# ----------------------------------------------------------------------------
# forward pass (glue in JAX, hot path in one Pallas call)
# ----------------------------------------------------------------------------
def dmel_hubert_ctc_forward(packed, dmel_tokens, seqlens):
    seqlens = tuple(int(l) for l in seqlens)
    S = dmel_tokens.shape[0]

    # dmel embedding: per-mel-bin codebook lookup (gather = glue)
    emb = jnp.take(packed["codebook_emb"], dmel_tokens, axis=0)       # (S, n_mels, E)
    emb = emb.reshape(S, N_MELS * EMB_DIM).astype(jnp.float32)

    # RoPE tables from positions_from_sizes(seqlens), de-interleaved layout
    positions = jnp.concatenate(
        [jnp.arange(l, dtype=jnp.float32) for l in seqlens])
    inv_freq = 1.0 / (ROPE_THETA ** (jnp.arange(0, HEAD_DIM, 2, dtype=jnp.float32)
                                     / HEAD_DIM))
    ang = positions[:, None] * inv_freq[None, :]                      # (S, hd/2)
    cos64 = jnp.concatenate([jnp.cos(ang), jnp.cos(ang)], axis=1)     # (S, hd)
    sin64 = jnp.concatenate([jnp.sin(ang), jnp.sin(ang)], axis=1)     # (S, hd)

    # per-row segment ids for the in-kernel block-diagonal mask
    seg = jnp.concatenate([jnp.full((l,), i, dtype=jnp.int32)
                           for i, l in enumerate(seqlens)])
    seg_col = seg.reshape(S, 1)
    seg_row = seg.reshape(1, S)

    def _full(shape):
        nd = len(shape)
        return pl.BlockSpec(shape, lambda l, nd=nd: (0,) * nd)

    def _per_layer(d1, d2):
        return pl.BlockSpec((None, d1, d2), lambda l: (l, 0, 0))

    in_specs = [
        _full((S, N_MELS * EMB_DIM)),               # embedded dmel (layer-0 only)
        _full((N_MELS * EMB_DIM, MODEL_DIM)),       # embedding projection (bf16)
        _full((1, MODEL_DIM)),                      # embedding bias
        _full((1, MODEL_DIM)),                      # pre-encoder RMSNorm weight
        _full((S, 1)),                              # segment ids (column)
        _full((1, S)),                              # segment ids (row)
        _full((S, HEAD_DIM)),                       # cos table
        _full((S, HEAD_DIM)),                       # sin table
        _full((MODEL_DIM, VOCAB_PAD)),              # padded CTC projection (bf16)
        _full((1, VOCAB_PAD)),                      # padded CTC bias
        _per_layer(1, MODEL_DIM),                   # attention norm weight
        _per_layer(1, MODEL_DIM),                   # ffn norm weight
        _per_layer(MODEL_DIM, 3 * MODEL_DIM),       # fused wq|wk|wv (bf16)
        _per_layer(MODEL_DIM, MODEL_DIM),           # wo (bf16)
        _per_layer(MODEL_DIM, 2 * HIDDEN),          # fused w1|w3 (bf16)
        _per_layer(HIDDEN, MODEL_DIM),              # w2 (bf16)
    ]

    logits_pad = pl.pallas_call(
        fused_forward_kernel,
        grid=(N_LAYERS,),
        in_specs=in_specs,
        out_specs=_full((S, VOCAB_PAD)),
        out_shape=jax.ShapeDtypeStruct((S, VOCAB_PAD), jnp.float32),
        scratch_shapes=[
            pltpu.VMEM((S, MODEL_DIM), jnp.float32),   # resident activation
            pltpu.VMEM((S, S), jnp.float32),           # block-diagonal mask
        ],
        compiler_params=pltpu.CompilerParams(dimension_semantics=("arbitrary",)),
    )(emb, packed["emb_proj_w"], packed["emb_proj_b"], packed["pre_norm_w"],
      seg_col, seg_row, cos64, sin64,
      packed["proj_w_pad"], packed["proj_b_pad"],
      packed["anw"], packed["fnw"], packed["wqkv"], packed["wo"],
      packed["w13"], packed["w2"])

    return logits_pad[:, :VOCAB]   # float32 (matches logits.float())


# ----------------------------------------------------------------------------
# deterministic synthetic parameters
# ----------------------------------------------------------------------------
def init_params(key):
    keys = jax.random.split(key, 3 + N_LAYERS)

    def nrm(k, shape, s=0.02):
        return jax.random.normal(k, shape, jnp.float32) * s

    params = {
        "codebook_emb": nrm(keys[0], (CODEBOOK, EMB_DIM), 1.0),
        "emb_proj_w": nrm(keys[1], (N_MELS * EMB_DIM, MODEL_DIM)),
        "emb_proj_b": jnp.zeros((1, MODEL_DIM), jnp.float32),
        "pre_norm_w": jnp.ones((1, MODEL_DIM), jnp.float32),
        "proj_w": nrm(keys[2], (MODEL_DIM, VOCAB)),
        "proj_b": jnp.zeros((1, VOCAB), jnp.float32),
        "layers": [],
    }
    for li in range(N_LAYERS):
        lk = jax.random.split(keys[3 + li], 7)
        params["layers"].append({
            "attn_norm": jnp.ones((1, MODEL_DIM), jnp.float32),
            "ffn_norm": jnp.ones((1, MODEL_DIM), jnp.float32),
            "wq": nrm(lk[0], (MODEL_DIM, MODEL_DIM)),
            "wk": nrm(lk[1], (MODEL_DIM, MODEL_DIM)),
            "wv": nrm(lk[2], (MODEL_DIM, MODEL_DIM)),
            "wo": nrm(lk[3], (MODEL_DIM, MODEL_DIM)),
            "w1": nrm(lk[4], (MODEL_DIM, HIDDEN)),
            "w3": nrm(lk[5], (MODEL_DIM, HIDDEN)),
            "w2": nrm(lk[6], (HIDDEN, MODEL_DIM)),
        })
    return params


if __name__ == "__main__":
    key = jax.random.PRNGKey(0)
    pkey, dkey = jax.random.split(key)
    params = init_params(pkey)
    packed = prepare_params(params)      # one-time weight packing (hoisted)

    seqlens = [6, 10]                    # packed sequences, total S = 16
    S = sum(seqlens)
    dmel_tokens = jax.random.randint(dkey, (S, N_MELS), 0, CODEBOOK, dtype=jnp.int32)

    logits = dmel_hubert_ctc_forward(packed, dmel_tokens, seqlens)
    logits = jax.block_until_ready(logits)
    assert logits.shape == (S, VOCAB) and logits.dtype == jnp.float32
    assert bool(jnp.all(jnp.isfinite(logits)))
    print("KERNEL_OK")
</pallas_src>

<mosaic_0001>
module attributes {stable_mosaic.version = 11 : i64} {
  func.func @fused_forward_kernel(%arg0: i32, %arg1: memref<16x128xf32, #tpu.memory_space<vmem>>, %arg2: memref<128x128xbf16, #tpu.memory_space<vmem>>, %arg3: memref<1x128xf32, #tpu.memory_space<vmem>>, %arg4: memref<1x128xf32, #tpu.memory_space<vmem>>, %arg5: memref<16x1xi32, #tpu.memory_space<vmem>>, %arg6: memref<1x16xi32, #tpu.memory_space<vmem>>, %arg7: memref<16x64xf32, #tpu.memory_space<vmem>>, %arg8: memref<16x64xf32, #tpu.memory_space<vmem>>, %arg9: memref<128x128xbf16, #tpu.memory_space<vmem>>, %arg10: memref<1x128xf32, #tpu.memory_space<vmem>>, %arg11: memref<1x1x128xf32, #tpu.memory_space<vmem>>, %arg12: memref<1x1x128xf32, #tpu.memory_space<vmem>>, %arg13: memref<1x128x384xbf16, #tpu.memory_space<vmem>>, %arg14: memref<1x128x128xbf16, #tpu.memory_space<vmem>>, %arg15: memref<1x128x1024xbf16, #tpu.memory_space<vmem>>, %arg16: memref<1x512x128xbf16, #tpu.memory_space<vmem>>, %arg17: memref<16x128xf32, #tpu.memory_space<vmem>>, %arg18: memref<16x128xf32, #tpu.memory_space<vmem>>, %arg19: memref<16x16xf32, #tpu.memory_space<vmem>>) attributes {dimension_semantics = [#tpu.dimension_semantics<arbitrary>], iteration_bounds = array<i64: 2>, scalar_prefetch = 0 : i64, scratch_operands = 2 : i64, tpu.core_type = #tpu.core_type<tc>, window_params = [{pipeline_mode = #tpu.pipeline_mode<synchronous>, transform_indices = @transform_0, window_bounds = array<i64: 16, 128>}, {pipeline_mode = #tpu.pipeline_mode<synchronous>, transform_indices = @transform_1, window_bounds = array<i64: 128, 128>}, {pipeline_mode = #tpu.pipeline_mode<synchronous>, transform_indices = @transform_2, window_bounds = array<i64: 1, 128>}, {pipeline_mode = #tpu.pipeline_mode<synchronous>, transform_indices = @transform_3, window_bounds = array<i64: 1, 128>}, {pipeline_mode = #tpu.pipeline_mode<synchronous>, transform_indices = @transform_4, window_bounds = array<i64: 16, 1>}, {pipeline_mode = #tpu.pipeline_mode<synchronous>, transform_indices = @transform_5, window_bounds = array<i64: 1, 16>}, {pipeline_mode = #tpu.pipeline_mode<synchronous>, transform_indices = @transform_6, window_bounds = array<i64: 16, 64>}, {pipeline_mode = #tpu.pipeline_mode<synchronous>, transform_indices = @transform_7, window_bounds = array<i64: 16, 64>}, {pipeline_mode = #tpu.pipeline_mode<synchronous>, transform_indices = @transform_8, window_bounds = array<i64: 128, 128>}, {pipeline_mode = #tpu.pipeline_mode<synchronous>, transform_indices = @transform_9, window_bounds = array<i64: 1, 128>}, {transform_indices = @transform_10, window_bounds = array<i64: 1, 1, 128>}, {transform_indices = @transform_11, window_bounds = array<i64: 1, 1, 128>}, {transform_indices = @transform_12, window_bounds = array<i64: 1, 128, 384>}, {transform_indices = @transform_13, window_bounds = array<i64: 1, 128, 128>}, {transform_indices = @transform_14, window_bounds = array<i64: 1, 128, 1024>}, {transform_indices = @transform_15, window_bounds = array<i64: 1, 512, 128>}, {pipeline_mode = #tpu.pipeline_mode<synchronous>, transform_indices = @transform_16, window_bounds = array<i64: 16, 128>}]} {
    %c0_i32 = arith.constant 0 : i32
    %0 = arith.cmpi eq, %arg0, %c0_i32 : i32
    %1 = arith.extui %0 : i1 to i32
    %c0_i32_0 = arith.constant 0 : i32
    %2 = arith.cmpi ne, %1, %c0_i32_0 : i32
    scf.if %2 {
      %c0_57 = arith.constant 0 : index
      %c0_58 = arith.constant 0 : index
      %149 = vector.load %arg1[%c0_57, %c0_58] : memref<16x128xf32, #tpu.memory_space<vmem>>, vector<16x128xf32>
      %150 = arith.truncf %149 : vector<16x128xf32> to vector<16x128xbf16>
      %c0_59 = arith.constant 0 : index
      %c0_60 = arith.constant 0 : index
      %151 = vector.load %arg2[%c0_59, %c0_60] : memref<128x128xbf16, #tpu.memory_space<vmem>>, vector<128x128xbf16>
      %cst_61 = arith.constant dense<0.000000e+00> : vector<16x128xf32>
      %152 = tpu.matmul %150, %151, %cst_61 {dimension_numbers = #tpu.dot_dimension_numbers<[1], [0], [0], [1], [0, 0, 1, 1], [], []>} : vector<16x128xbf16>, vector<128x128xbf16>, vector<16x128xf32> -> vector<16x128xf32>
      %c0_62 = arith.constant 0 : index
      %c0_63 = arith.constant 0 : index
      %153 = vector.load %arg3[%c0_62, %c0_63] : memref<1x128xf32, #tpu.memory_space<vmem>>, vector<1x128xf32>
      %154 = vector.broadcast %153 : vector<1x128xf32> to vector<16x128xf32>
      %155 = arith.addf %152, %154 : vector<16x128xf32>
      %c0_64 = arith.constant 0 : index
      %c0_65 = arith.constant 0 : index
      %156 = vector.load %arg4[%c0_64, %c0_65] : memref<1x128xf32, #tpu.memory_space<vmem>>, vector<1x128xf32>
      %157 = arith.mulf %155, %155 : vector<16x128xf32>
      %cst_66 = arith.constant dense<0.000000e+00> : vector<16xf32>
      %158 = vector.multi_reduction <add>, %157, %cst_66 [1] : vector<16x128xf32> to vector<16xf32>
      %159 = vector.shape_cast %158 : vector<16xf32> to vector<16x1xf32>
      %cst_67 = arith.constant 1.280000e+02 : f32
      %160 = vector.broadcast %cst_67 : f32 to vector<16x1xf32>
      %161 = arith.divf %159, %160 : vector<16x1xf32>
      %cst_68 = arith.constant 9.99999997E-7 : f32
      %162 = vector.broadcast %cst_68 : f32 to vector<16x1xf32>
      %163 = arith.addf %161, %162 : vector<16x1xf32>
      %164 = math.rsqrt %163 : vector<16x1xf32>
      %165 = vector.broadcast %164 : vector<16x1xf32> to vector<16x128xf32>
      %166 = arith.mulf %155, %165 : vector<16x128xf32>
      %167 = vector.broadcast %156 : vector<1x128xf32> to vector<16x128xf32>
      %168 = arith.mulf %166, %167 : vector<16x128xf32>
      %c0_69 = arith.constant 0 : index
      %c0_70 = arith.constant 0 : index
      %169 = vector.load %arg18[%c0_69, %c0_70] : memref<16x128xf32, #tpu.memory_space<vmem>>, vector<16x128xf32>
      tpu.vector_store %arg18[%c0_69, %c0_70], %168 {strides = array<i32>} : memref<16x128xf32, #tpu.memory_space<vmem>>, vector<16x128xf32>,
      %c0_71 = arith.constant 0 : index
      %c0_72 = arith.constant 0 : index
      %170 = vector.load %arg5[%c0_71, %c0_72] : memref<16x1xi32, #tpu.memory_space<vmem>>, vector<16x1xi32>
      %c0_73 = arith.constant 0 : index
      %c0_74 = arith.constant 0 : index
      %171 = vector.load %arg6[%c0_73, %c0_74] : memref<1x16xi32, #tpu.memory_space<vmem>>, vector<1x16xi32>
      %172 = vector.broadcast %170 : vector<16x1xi32> to vector<16x16xi32>
      %173 = vector.broadcast %171 : vector<1x16xi32> to vector<16x16xi32>
      %174 = arith.cmpi eq, %172, %173 : vector<16x16xi32>
      %cst_75 = arith.constant 0.000000e+00 : f32
      %cst_76 = arith.constant -1.000000e+30 : f32
      %175 = vector.broadcast %cst_75 : f32 to vector<16x16xf32>
      %176 = vector.broadcast %cst_76 : f32 to vector<16x16xf32>
      %177 = arith.select %174, %175, %176 : vector<16x16xi1>, vector<16x16xf32>
      %c0_77 = arith.constant 0 : index
      %c0_78 = arith.constant 0 : index
      %178 = vector.load %arg19[%c0_77, %c0_78] : memref<16x16xf32, #tpu.memory_space<vmem>>, vector<16x16xf32>
      tpu.vector_store %arg19[%c0_77, %c0_78], %177 {strides = array<i32>} : memref<16x16xf32, #tpu.memory_space<vmem>>, vector<16x16xf32>,
    } else {
    }
    %c0 = arith.constant 0 : index
    %c0_1 = arith.constant 0 : index
    %3 = vector.load %arg18[%c0, %c0_1] : memref<16x128xf32, #tpu.memory_space<vmem>>, vector<16x128xf32>
    %c0_2 = arith.constant 0 : index
    %c0_3 = arith.constant 0 : index
    %4 = vector.load %arg19[%c0_2, %c0_3] : memref<16x16xf32, #tpu.memory_space<vmem>>, vector<16x16xf32>
    %c0_4 = arith.constant 0 : index
    %c0_5 = arith.constant 0 : index
    %5 = vector.load %arg7[%c0_4, %c0_5] : memref<16x64xf32, #tpu.memory_space<vmem>>, vector<16x64xf32>
    %c0_6 = arith.constant 0 : index
    %c0_7 = arith.constant 0 : index
    %6 = vector.load %arg8[%c0_6, %c0_7] : memref<16x64xf32, #tpu.memory_space<vmem>>, vector<16x64xf32>
    %c0_8 = arith.constant 0 : index
    %c0_9 = arith.constant 0 : index
    %c0_10 = arith.constant 0 : index
    %7 = vector.load %arg11[%c0_8, %c0_9, %c0_10] : memref<1x1x128xf32, #tpu.memory_space<vmem>>, vector<1x1x128xf32>
    %8 = vector.shape_cast %7 : vector<1x1x128xf32> to vector<1x128xf32>
    %9 = arith.mulf %3, %3 : vector<16x128xf32>
    %cst = arith.constant dense<0.000000e+00> : vector<16xf32>
    %10 = vector.multi_reduction <add>, %9, %cst [1] : vector<16x128xf32> to vector<16xf32>
    %11 = vector.shape_cast %10 : vector<16xf32> to vector<16x1xf32>
    %cst_11 = arith.constant 1.280000e+02 : f32
    %12 = vector.broadcast %cst_11 : f32 to vector<16x1xf32>
    %13 = arith.divf %11, %12 : vector<16x1xf32>
    %cst_12 = arith.constant 9.99999997E-7 : f32
    %14 = vector.broadcast %cst_12 : f32 to vector<16x1xf32>
    %15 = arith.addf %13, %14 : vector<16x1xf32>
    %16 = math.rsqrt %15 : vector<16x1xf32>
    %17 = vector.broadcast %16 : vector<16x1xf32> to vector<16x128xf32>
    %18 = arith.mulf %3, %17 : vector<16x128xf32>
    %19 = vector.broadcast %8 : vector<1x128xf32> to vector<16x128xf32>
    %20 = arith.mulf %18, %19 : vector<16x128xf32>
    %21 = arith.truncf %20 : vector<16x128xf32> to vector<16x128xbf16>
    %c0_13 = arith.constant 0 : index
    %c0_14 = arith.constant 0 : index
    %c0_15 = arith.constant 0 : index
    %22 = vector.load %arg13[%c0_13, %c0_14, %c0_15] : memref<1x128x384xbf16, #tpu.memory_space<vmem>>, vector<1x128x384xbf16>
    %23 = vector.shape_cast %22 : vector<1x128x384xbf16> to vector<128x384xbf16>
    %cst_16 = arith.constant dense<0.000000e+00> : vector<16x384xf32>
    %24 = tpu.matmul %21, %23, %cst_16 {dimension_numbers = #tpu.dot_dimension_numbers<[1], [0], [0], [1], [0, 0, 1, 1], [], []>} : vector<16x128xbf16>, vector<128x384xbf16>, vector<16x384xf32> -> vector<16x384xf32>
    %25 = vector.extract_strided_slice %24 {offsets = [0, 0], sizes = [16, 128], strides = [1, 1]} : vector<16x384xf32> to vector<16x128xf32>
    %26 = vector.extract_strided_slice %24 {offsets = [0, 128], sizes = [16, 128], strides = [1, 1]} : vector<16x384xf32> to vector<16x128xf32>
    %27 = vector.extract_strided_slice %24 {offsets = [0, 256], sizes = [16, 128], strides = [1, 1]} : vector<16x384xf32> to vector<16x128xf32>
    %28 = arith.truncf %27 : vector<16x128xf32> to vector<16x128xbf16>
    %cst_17 = arith.constant 0.000000e+00 : f32
    %29 = vector.broadcast %cst_17 : f32 to vector<16x128xf32>
    %30 = vector.extract_strided_slice %25 {offsets = [0, 0], sizes = [16, 64], strides = [1, 1]} : vector<16x128xf32> to vector<16x64xf32>
    %31 = vector.extract_strided_slice %30 {offsets = [0, 0], sizes = [16, 32], strides = [1, 1]} : vector<16x64xf32> to vector<16x32xf32>
    %32 = vector.extract_strided_slice %30 {offsets = [0, 32], sizes = [16, 32], strides = [1, 1]} : vector<16x64xf32> to vector<16x32xf32>
    %cst_18 = arith.constant 0.000000e+00 : f32
    %33 = vector.broadcast %cst_18 : f32 to vector<16x32xf32>
    %34 = arith.subf %33, %32 : vector<16x32xf32>
    %35 = tpu.concatenate %34, %31 in 1 : vector<16x32xf32>, vector<16x32xf32> -> vector<16x64xf32>
    %36 = arith.mulf %30, %5 : vector<16x64xf32>
    %37 = arith.mulf %35, %6 : vector<16x64xf32>
    %38 = arith.addf %36, %37 : vector<16x64xf32>
    %39 = arith.truncf %38 : vector<16x64xf32> to vector<16x64xbf16>
    %40 = vector.extract_strided_slice %26 {offsets = [0, 0], sizes = [16, 64], strides = [1, 1]} : vector<16x128xf32> to vector<16x64xf32>
    %41 = vector.extract_strided_slice %40 {offsets = [0, 0], sizes = [16, 32], strides = [1, 1]} : vector<16x64xf32> to vector<16x32xf32>
    %42 = vector.extract_strided_slice %40 {offsets = [0, 32], sizes = [16, 32], strides = [1, 1]} : vector<16x64xf32> to vector<16x32xf32>
    %cst_19 = arith.constant 0.000000e+00 : f32
    %43 = vector.broadcast %cst_19 : f32 to vector<16x32xf32>
    %44 = arith.subf %43, %42 : vector<16x32xf32>
    %45 = tpu.concatenate %44, %41 in 1 : vector<16x32xf32>, vector<16x32xf32> -> vector<16x64xf32>
    %46 = arith.mulf %40, %5 : vector<16x64xf32>
    %47 = arith.mulf %45, %6 : vector<16x64xf32>
    %48 = arith.addf %46, %47 : vector<16x64xf32>
    %49 = arith.truncf %48 : vector<16x64xf32> to vector<16x64xbf16>
    %cst_20 = arith.constant dense<0.000000e+00> : vector<16x16xf32>
    %50 = tpu.matmul %39, %49, %cst_20 {dimension_numbers = #tpu.dot_dimension_numbers<[1], [1], [0], [0], [0, 0, 1, 0], [], []>} : vector<16x64xbf16>, vector<16x64xbf16>, vector<16x16xf32> -> vector<16x16xf32>
    %cst_21 = arith.constant 1.250000e-01 : f32
    %51 = vector.broadcast %cst_21 : f32 to vector<16x16xf32>
    %52 = arith.mulf %50, %51 : vector<16x16xf32>
    %53 = arith.addf %52, %4 : vector<16x16xf32>
    %cst_22 = arith.constant dense<0xFF800000> : vector<16xf32>
    %54 = vector.multi_reduction <maximumf>, %53, %cst_22 [1] : vector<16x16xf32> to vector<16xf32>
    %55 = vector.shape_cast %54 : vector<16xf32> to vector<16x1xf32>
    %56 = vector.broadcast %55 : vector<16x1xf32> to vector<16x16xf32>
    %57 = arith.subf %53, %56 : vector<16x16xf32>
    %58 = math.exp %57 : vector<16x16xf32>
    %cst_23 = arith.constant dense<0.000000e+00> : vector<16xf32>
    %59 = vector.multi_reduction <add>, %58, %cst_23 [1] : vector<16x16xf32> to vector<16xf32>
    %60 = vector.shape_cast %59 : vector<16xf32> to vector<16x1xf32>
    %61 = vector.broadcast %60 : vector<16x1xf32> to vector<16x16xf32>
    %62 = arith.divf %58, %61 : vector<16x16xf32>
    %63 = arith.truncf %62 : vector<16x16xf32> to vector<16x16xbf16>
    %64 = vector.extract_strided_slice %28 {offsets = [0, 0], sizes = [16, 64], strides = [1, 1]} : vector<16x128xbf16> to vector<16x64xbf16>
    %cst_24 = arith.constant dense<0.000000e+00> : vector<16x64xf32>
    %65 = tpu.matmul %63, %64, %cst_24 {dimension_numbers = #tpu.dot_dimension_numbers<[1], [0], [0], [1], [0, 0, 1, 1], [], []>} : vector<16x16xbf16>, vector<16x64xbf16>, vector<16x64xf32> -> vector<16x64xf32>
    %66 = arith.truncf %65 : vector<16x64xf32> to vector<16x64xbf16>
    %c0_25 = arith.constant 0 : index
    %c0_26 = arith.constant 0 : index
    %c0_27 = arith.constant 0 : index
    %67 = vector.load %arg14[%c0_25, %c0_26, %c0_27] : memref<1x128x128xbf16, #tpu.memory_space<vmem>>, vector<1x64x128xbf16>
    %68 = vector.shape_cast %67 : vector<1x64x128xbf16> to vector<64x128xbf16>
    %cst_28 = arith.constant dense<0.000000e+00> : vector<16x128xf32>
    %69 = tpu.matmul %66, %68, %cst_28 {dimension_numbers = #tpu.dot_dimension_numbers<[1], [0], [0], [1], [0, 0, 1, 1], [], []>} : vector<16x64xbf16>, vector<64x128xbf16>, vector<16x128xf32> -> vector<16x128xf32>
    %70 = arith.addf %29, %69 : vector<16x128xf32>
    %71 = vector.extract_strided_slice %25 {offsets = [0, 64], sizes = [16, 64], strides = [1, 1]} : vector<16x128xf32> to vector<16x64xf32>
    %72 = vector.extract_strided_slice %71 {offsets = [0, 0], sizes = [16, 32], strides = [1, 1]} : vector<16x64xf32> to vector<16x32xf32>
    %73 = vector.extract_strided_slice %71 {offsets = [0, 32], sizes = [16, 32], strides = [1, 1]} : vector<16x64xf32> to vector<16x32xf32>
    %cst_29 = arith.constant 0.000000e+00 : f32
    %74 = vector.broadcast %cst_29 : f32 to vector<16x32xf32>
    %75 = arith.subf %74, %73 : vector<16x32xf32>
    %76 = tpu.concatenate %75, %72 in 1 : vector<16x32xf32>, vector<16x32xf32> -> vector<16x64xf32>
    %77 = arith.mulf %71, %5 : vector<16x64xf32>
    %78 = arith.mulf %76, %6 : vector<16x64xf32>
    %79 = arith.addf %77, %78 : vector<16x64xf32>
    %80 = arith.truncf %79 : vector<16x64xf32> to vector<16x64xbf16>
    %81 = vector.extract_strided_slice %26 {offsets = [0, 64], sizes = [16, 64], strides = [1, 1]} : vector<16x128xf32> to vector<16x64xf32>
    %82 = vector.extract_strided_slice %81 {offsets = [0, 0], sizes = [16, 32], strides = [1, 1]} : vector<16x64xf32> to vector<16x32xf32>
    %83 = vector.extract_strided_slice %81 {offsets = [0, 32], sizes = [16, 32], strides = [1, 1]} : vector<16x64xf32> to vector<16x32xf32>
    %cst_30 = arith.constant 0.000000e+00 : f32
    %84 = vector.broadcast %cst_30 : f32 to vector<16x32xf32>
    %85 = arith.subf %84, %83 : vector<16x32xf32>
    %86 = tpu.concatenate %85, %82 in 1 : vector<16x32xf32>, vector<16x32xf32> -> vector<16x64xf32>
    %87 = arith.mulf %81, %5 : vector<16x64xf32>
    %88 = arith.mulf %86, %6 : vector<16x64xf32>
    %89 = arith.addf %87, %88 : vector<16x64xf32>
    %90 = arith.truncf %89 : vector<16x64xf32> to vector<16x64xbf16>
    %cst_31 = arith.constant dense<0.000000e+00> : vector<16x16xf32>
    %91 = tpu.matmul %80, %90, %cst_31 {dimension_numbers = #tpu.dot_dimension_numbers<[1], [1], [0], [0], [0, 0, 1, 0], [], []>} : vector<16x64xbf16>, vector<16x64xbf16>, vector<16x16xf32> -> vector<16x16xf32>
    %cst_32 = arith.constant 1.250000e-01 : f32
    %92 = vector.broadcast %cst_32 : f32 to vector<16x16xf32>
    %93 = arith.mulf %91, %92 : vector<16x16xf32>
    %94 = arith.addf %93, %4 : vector<16x16xf32>
    %cst_33 = arith.constant dense<0xFF800000> : vector<16xf32>
    %95 = vector.multi_reduction <maximumf>, %94, %cst_33 [1] : vector<16x16xf32> to vector<16xf32>
    %96 = vector.shape_cast %95 : vector<16xf32> to vector<16x1xf32>
    %97 = vector.broadcast %96 : vector<16x1xf32> to vector<16x16xf32>
    %98 = arith.subf %94, %97 : vector<16x16xf32>
    %99 = math.exp %98 : vector<16x16xf32>
    %cst_34 = arith.constant dense<0.000000e+00> : vector<16xf32>
    %100 = vector.multi_reduction <add>, %99, %cst_34 [1] : vector<16x16xf32> to vector<16xf32>
    %101 = vector.shape_cast %100 : vector<16xf32> to vector<16x1xf32>
    %102 = vector.broadcast %101 : vector<16x1xf32> to vector<16x16xf32>
    %103 = arith.divf %99, %102 : vector<16x16xf32>
    %104 = arith.truncf %103 : vector<16x16xf32> to vector<16x16xbf16>
    %105 = vector.extract_strided_slice %28 {offsets = [0, 64], sizes = [16, 64], strides = [1, 1]} : vector<16x128xbf16> to vector<16x64xbf16>
    %cst_35 = arith.constant dense<0.000000e+00> : vector<16x64xf32>
    %106 = tpu.matmul %104, %105, %cst_35 {dimension_numbers = #tpu.dot_dimension_numbers<[1], [0], [0], [1], [0, 0, 1, 1], [], []>} : vector<16x16xbf16>, vector<16x64xbf16>, vector<16x64xf32> -> vector<16x64xf32>
    %107 = arith.truncf %106 : vector<16x64xf32> to vector<16x64xbf16>
    %c0_36 = arith.constant 0 : index
    %c64 = arith.constant 64 : index
    %c0_37 = arith.constant 0 : index
    %108 = vector.load %arg14[%c0_36, %c64, %c0_37] : memref<1x128x128xbf16, #tpu.memory_space<vmem>>, vector<1x64x128xbf16>
    %109 = vector.shape_cast %108 : vector<1x64x128xbf16> to vector<64x128xbf16>
    %cst_38 = arith.constant dense<0.000000e+00> : vector<16x128xf32>
    %110 = tpu.matmul %107, %109, %cst_38 {dimension_numbers = #tpu.dot_dimension_numbers<[1], [0], [0], [1], [0, 0, 1, 1], [], []>} : vector<16x64xbf16>, vector<64x128xbf16>, vector<16x128xf32> -> vector<16x128xf32>
    %111 = arith.addf %70, %110 : vector<16x128xf32>
    %112 = arith.addf %3, %111 : vector<16x128xf32>
    %c0_39 = arith.constant 0 : index
    %c0_40 = arith.constant 0 : index
    %c0_41 = arith.constant 0 : index
    %113 = vector.load %arg12[%c0_39, %c0_40, %c0_41] : memref<1x1x128xf32, #tpu.memory_space<vmem>>, vector<1x1x128xf32>
    %114 = vector.shape_cast %113 : vector<1x1x128xf32> to vector<1x128xf32>
    %115 = arith.mulf %112, %112 : vector<16x128xf32>
    %cst_42 = arith.constant dense<0.000000e+00> : vector<16xf32>
    %116 = vector.multi_reduction <add>, %115, %cst_42 [1] : vector<16x128xf32> to vector<16xf32>
    %117 = vector.shape_cast %116 : vector<16xf32> to vector<16x1xf32>
    %cst_43 = arith.constant 1.280000e+02 : f32
    %118 = vector.broadcast %cst_43 : f32 to vector<16x1xf32>
    %119 = arith.divf %117, %118 : vector<16x1xf32>
    %cst_44 = arith.constant 9.99999997E-7 : f32
    %120 = vector.broadcast %cst_44 : f32 to vector<16x1xf32>
    %121 = arith.addf %119, %120 : vector<16x1xf32>
    %122 = math.rsqrt %121 : vector<16x1xf32>
    %123 = vector.broadcast %122 : vector<16x1xf32> to vector<16x128xf32>
    %124 = arith.mulf %112, %123 : vector<16x128xf32>
    %125 = vector.broadcast %114 : vector<1x128xf32> to vector<16x128xf32>
    %126 = arith.mulf %124, %125 : vector<16x128xf32>
    %127 = arith.truncf %126 : vector<16x128xf32> to vector<16x128xbf16>
    %c0_45 = arith.constant 0 : index
    %c0_46 = arith.constant 0 : index
    %c0_47 = arith.constant 0 : index
    %128 = vector.load %arg15[%c0_45, %c0_46, %c0_47] : memref<1x128x1024xbf16, #tpu.memory_space<vmem>>, vector<1x128x1024xbf16>
    %129 = vector.shape_cast %128 : vector<1x128x1024xbf16> to vector<128x1024xbf16>
    %cst_48 = arith.constant dense<0.000000e+00> : vector<16x1024xf32>
    %130 = tpu.matmul %127, %129, %cst_48 {dimension_numbers = #tpu.dot_dimension_numbers<[1], [0], [0], [1], [0, 0, 1, 1], [], []>} : vector<16x128xbf16>, vector<128x1024xbf16>, vector<16x1024xf32> -> vector<16x1024xf32>
    %131 = vector.extract_strided_slice %130 {offsets = [0, 0], sizes = [16, 512], strides = [1, 1]} : vector<16x1024xf32> to vector<16x512xf32>
    %132 = vector.extract_strided_slice %130 {offsets = [0, 512], sizes = [16, 512], strides = [1, 1]} : vector<16x1024xf32> to vector<16x512xf32>
    %133 = arith.negf %131 : vector<16x512xf32>
    %134 = math.exp %133 : vector<16x512xf32>
    %cst_49 = arith.constant 1.000000e+00 : f32
    %135 = vector.broadcast %cst_49 : f32 to vector<16x512xf32>
    %136 = arith.addf %135, %134 : vector<16x512xf32>
    %137 = arith.divf %135, %136 : vector<16x512xf32>
    %138 = arith.mulf %131, %137 : vector<16x512xf32>
    %139 = arith.mulf %138, %132 : vector<16x512xf32>
    %140 = arith.truncf %139 : vector<16x512xf32> to vector<16x512xbf16>
    %c0_50 = arith.constant 0 : index
    %c0_51 = arith.constant 0 : index
    %c0_52 = arith.constant 0 : index
    %141 = vector.load %arg16[%c0_50, %c0_51, %c0_52] : memref<1x512x128xbf16, #tpu.memory_space<vmem>>, vector<1x512x128xbf16>
    %142 = vector.shape_cast %141 : vector<1x512x128xbf16> to vector<512x128xbf16>
    %cst_53 = arith.constant dense<0.000000e+00> : vector<16x128xf32>
    %143 = tpu.matmul %140, %142, %cst_53 {dimension_numbers = #tpu.dot_dimension_numbers<[1], [0], [0], [1], [0, 0, 1, 1], [], []>} : vector<16x512xbf16>, vector<512x128xbf16>, vector<16x128xf32> -> vector<16x128xf32>
    %144 = arith.addf %112, %143 : vector<16x128xf32>
    %c0_54 = arith.constant 0 : index
    %c0_55 = arith.constant 0 : index
    %145 = vector.load %arg18[%c0_54, %c0_55] : memref<16x128xf32, #tpu.memory_space<vmem>>, vector<16x128xf32>
    tpu.vector_store %arg18[%c0_54, %c0_55], %144 {strides = array<i32>} : memref<16x128xf32, #tpu.memory_space<vmem>>, vector<16x128xf32>,
    %c1_i32 = arith.constant 1 : i32
    %146 = arith.cmpi eq, %arg0, %c1_i32 : i32
    %147 = arith.extui %146 : i1 to i32
    %c0_i32_56 = arith.constant 0 : i32
    %148 = arith.cmpi ne, %147, %c0_i32_56 : i32
    scf.if %148 {
      %149 = arith.truncf %144 : vector<16x128xf32> to vector<16x128xbf16>
      %c0_57 = arith.constant 0 : index
      %c0_58 = arith.constant 0 : index
      %150 = vector.load %arg9[%c0_57, %c0_58] : memref<128x128xbf16, #tpu.memory_space<vmem>>, vector<128x128xbf16>
      %cst_59 = arith.constant dense<0.000000e+00> : vector<16x128xf32>
      %151 = tpu.matmul %149, %150, %cst_59 {dimension_numbers = #tpu.dot_dimension_numbers<[1], [0], [0], [1], [0, 0, 1, 1], [], []>} : vector<16x128xbf16>, vector<128x128xbf16>, vector<16x128xf32> -> vector<16x128xf32>
      %c0_60 = arith.constant 0 : index
      %c0_61 = arith.constant 0 : index
      %152 = vector.load %arg10[%c0_60, %c0_61] : memref<1x128xf32, #tpu.memory_space<vmem>>, vector<1x128xf32>
      %153 = vector.broadcast %152 : vector<1x128xf32> to vector<16x128xf32>
      %154 = arith.addf %151, %153 : vector<16x128xf32>
      %c0_62 = arith.constant 0 : index
      %c0_63 = arith.constant 0 : index
      %155 = vector.load %arg17[%c0_62, %c0_63] : memref<16x128xf32, #tpu.memory_space<vmem>>, vector<16x128xf32>
      tpu.vector_store %arg17[%c0_62, %c0_63], %154 {strides = array<i32>} : memref<16x128xf32, #tpu.memory_space<vmem>>, vector<16x128xf32>,
    } else {
    }
    return
  }
  func.func @transform_0(%arg0: i32) -> (i32, i32) {
    %c0_i32 = arith.constant 0 : i32
    %c0_i32_0 = arith.constant 0 : i32
    %c0_i32_1 = arith.constant 0 : i32
    return %c0_i32, %c0_i32_0 : i32, i32
  }
  func.func @transform_1(%arg0: i32) -> (i32, i32) {
    %c0_i32 = arith.constant 0 : i32
    %c0_i32_0 = arith.constant 0 : i32
    %c0_i32_1 = arith.constant 0 : i32
    return %c0_i32, %c0_i32_0 : i32, i32
  }
  func.func @transform_2(%arg0: i32) -> (i32, i32) {
    %c0_i32 = arith.constant 0 : i32
    %c0_i32_0 = arith.constant 0 : i32
    %c0_i32_1 = arith.constant 0 : i32
    return %c0_i32, %c0_i32_0 : i32, i32
  }
  func.func @transform_3(%arg0: i32) -> (i32, i32) {
    %c0_i32 = arith.constant 0 : i32
    %c0_i32_0 = arith.constant 0 : i32
    %c0_i32_1 = arith.constant 0 : i32
    return %c0_i32, %c0_i32_0 : i32, i32
  }
  func.func @transform_4(%arg0: i32) -> (i32, i32) {
    %c0_i32 = arith.constant 0 : i32
    %c0_i32_0 = arith.constant 0 : i32
    %c0_i32_1 = arith.constant 0 : i32
    return %c0_i32, %c0_i32_0 : i32, i32
  }
  func.func @transform_5(%arg0: i32) -> (i32, i32) {
    %c0_i32 = arith.constant 0 : i32
    %c0_i32_0 = arith.constant 0 : i32
    %c0_i32_1 = arith.constant 0 : i32
    return %c0_i32, %c0_i32_0 : i32, i32
  }
  func.func @transform_6(%arg0: i32) -> (i32, i32) {
    %c0_i32 = arith.constant 0 : i32
    %c0_i32_0 = arith.constant 0 : i32
    %c0_i32_1 = arith.constant 0 : i32
    return %c0_i32, %c0_i32_0 : i32, i32
  }
  func.func @transform_7(%arg0: i32) -> (i32, i32) {
    %c0_i32 = arith.constant 0 : i32
    %c0_i32_0 = arith.constant 0 : i32
    %c0_i32_1 = arith.constant 0 : i32
    return %c0_i32, %c0_i32_0 : i32, i32
  }
  func.func @transform_8(%arg0: i32) -> (i32, i32) {
    %c0_i32 = arith.constant 0 : i32
    %c0_i32_0 = arith.constant 0 : i32
    %c0_i32_1 = arith.constant 0 : i32
    return %c0_i32, %c0_i32_0 : i32, i32
  }
  func.func @transform_9(%arg0: i32) -> (i32, i32) {
    %c0_i32 = arith.constant 0 : i32
    %c0_i32_0 = arith.constant 0 : i32
    %c0_i32_1 = arith.constant 0 : i32
    return %c0_i32, %c0_i32_0 : i32, i32
  }
  func.func @transform_10(%arg0: i32) -> (i32, i32, i32) {
    %c0_i32 = arith.constant 0 : i32
    %c0_i32_0 = arith.constant 0 : i32
    %c0_i32_1 = arith.constant 0 : i32
    return %arg0, %c0_i32, %c0_i32_0 : i32, i32, i32
  }
  func.func @transform_11(%arg0: i32) -> (i32, i32, i32) {
    %c0_i32 = arith.constant 0 : i32
    %c0_i32_0 = arith.constant 0 : i32
    %c0_i32_1 = arith.constant 0 : i32
    return %arg0, %c0_i32, %c0_i32_0 : i32, i32, i32
  }
  func.func @transform_12(%arg0: i32) -> (i32, i32, i32) {
    %c0_i32 = arith.constant 0 : i32
    %c0_i32_0 = arith.constant 0 : i32
    %c0_i32_1 = arith.constant 0 : i32
    return %arg0, %c0_i32, %c0_i32_0 : i32, i32, i32
  }
  func.func @transform_13(%arg0: i32) -> (i32, i32, i32) {
    %c0_i32 = arith.constant 0 : i32
    %c0_i32_0 = arith.constant 0 : i32
    %c0_i32_1 = arith.constant 0 : i32
    return %arg0, %c0_i32, %c0_i32_0 : i32, i32, i32
  }
  func.func @transform_14(%arg0: i32) -> (i32, i32, i32) {
    %c0_i32 = arith.constant 0 : i32
    %c0_i32_0 = arith.constant 0 : i32
    %c0_i32_1 = arith.constant 0 : i32
    return %arg0, %c0_i32, %c0_i32_0 : i32, i32, i32
  }
  func.func @transform_15(%arg0: i32) -> (i32, i32, i32) {
    %c0_i32 = arith.constant 0 : i32
    %c0_i32_0 = arith.constant 0 : i32
    %c0_i32_1 = arith.constant 0 : i32
    return %arg0, %c0_i32, %c0_i32_0 : i32, i32, i32
  }
  func.func @transform_16(%arg0: i32) -> (i32, i32) {
    %c0_i32 = arith.constant 0 : i32
    %c0_i32_0 = arith.constant 0 : i32
    %c0_i32_1 = arith.constant 0 : i32
    return %c0_i32, %c0_i32_0 : i32, i32
  }
}

</mosaic_0001>

<bundles_post_ra>
// kernel: tpu_custom_call.1
= control target key start
LH: loop header
LB: loop body
LE: loop exit
PB: predicated region body
PF: predicated region fallthrough
CT: control target
= control target key end

     0   :  { %s4876_s0 = inlined_call_operand.vmem [shape: f32[16,128], index: 0, kind: input, shape index: {}]   ;;  %s4877_s1 = inlined_call_operand.hbm [shape: bf16[128,128], index: 1, kind: input, shape index: {}]   ;;  %s4878_s2 = inlined_call_operand.hbm [shape: f32[1,128], index: 2, kind: input, shape index: {}]   ;;  %s4879_s3 = inlined_call_operand.hbm [shape: f32[1,128], index: 3, kind: input, shape index: {}]   ;;  %s4880_s4 = inlined_call_operand.vmem [shape: s32[16,1], index: 4, kind: input, shape index: {}]   ;;  %s4881_s5 = inlined_call_operand.vmem [shape: s32[1,16], index: 5, kind: input, shape index: {}]   ;;  %s4882_s6 = inlined_call_operand.vmem [shape: f32[16,64], index: 6, kind: input, shape index: {}]   ;;  %s4883_s7 = inlined_call_operand.hbm [shape: f32[16,64], index: 7, kind: input, shape index: {}]   ;;  %s4884_s8 = inlined_call_operand.hbm [shape: bf16[128,128], index: 8, kind: input, shape index: {}]   ;;  %s4885_s9 = inlined_call_operand.vmem [shape: f32[1,128], index: 9, kind: input, shape index: {}]   ;;  %s4886_s10 = inlined_call_operand.vmem [shape: f32[2,1,128], index: 10, kind: input, shape index: {}]   ;;  %s4887_s11 = inlined_call_operand.vmem [shape: f32[2,1,128], index: 11, kind: input, shape index: {}]   ;;  %s4888_s12 = inlined_call_operand.hbm [shape: bf16[2,128,384], index: 12, kind: input, shape index: {}]   ;;  %s4889_s13 = inlined_call_operand.hbm [shape: bf16[2,128,128], index: 13, kind: input, shape index: {}]   ;;  %s4890_s14 = inlined_call_operand.hbm [shape: bf16[2,128,1024], index: 14, kind: input, shape index: {}]   ;;  %s4891_s15 = inlined_call_operand.hbm [shape: bf16[2,512,128], index: 15, kind: input, shape index: {}]   ;;  %s4892_s16 = inlined_call_operand.hbm [shape: f32[16,128], index: 16, kind: output, shape index: {}]  }
   0x1   :  { %4915 = sst [smem:[#allocation31_spill]] %s4876_s0 }
   0x2   :  { %4916 = sst [smem:[#allocation32_spill]] %s4878_s2 }
   0x3   :  { %4917 = sst [smem:[#allocation33_spill]] %s4880_s4 }
   0x4   :  { %4918 = sst [smem:[#allocation34_spill]] %s4881_s5 }
   0x5   :  { %4919 = sst [smem:[#allocation35_spill]] %s4882_s6 }
   0x6   :  { %4920 = sst [smem:[#allocation36_spill]] %s4883_s7 }
   0x7   :  { %4921 = sst [smem:[#allocation37_spill]] %s4885_s9 }
   0x8   :  { %4922 = sst [smem:[#allocation38_spill]] %s4886_s10 }
   0x9   :  { %4923 = sst [smem:[#allocation39_spill]] %s4887_s11 }
   0xa   :  { %4924 = sst [smem:[#allocation40_spill]] %s4888_s12 }
   0xb   :  { %4925 = sst [smem:[#allocation41_spill]] %s4890_s14 }
   0xc   :  { %4926 = sst [smem:[#allocation42_spill]] %s4892_s16 }
   0xd   :  { %21 = vsyncpa [#allocation5], 0 }
   0xe   :  { %22 = vsyncpa [#allocation8], 0 }
   0xf   :  { %23 = vsyncpa [#allocation11], 0 }
  0x10   :  { %24 = vsyncpa [#allocation14], 0 }
  0x11   :  { %26 = vsyncpa [#allocation14 + $0x1], 0 }
  0x12   :  { %27 = vsyncpa [#allocation17], 0 }
  0x13   :  { %29 = vsyncpa [#allocation17 + $0x1], 0 }
  0x14   :  { %30 = vsyncpa [#allocation6], 0  ;;  %s4150_s21 = smov 0   ;;  %s4152_s22 = smov 0  }
  0x15   :  { %s4154_s23 = smov 0   ;;  %s4156_s24 = smov 0  }
  0x16 LB: > { %4927 = sst [smem:[#allocation26_spill]] %s4023_s22  ;;  %s4169_s25 = sadd.s32 4294967295, %s4031_s24   ;;  %s4031_s24 = sphi %s4156_s24, %s4968_s24   ;;  %s4027_s23 = sphi %s4154_s23, %s4971_s23   ;;  %s4023_s22 = sphi %s4152_s22, %s4970_s22   ;;  %s4019_s21 = sphi %s4150_s21, %s4969_s21  }
  0x17   : > { %4928 = sst [smem:[#allocation27_spill]] %s4027_s23  ;;  %p318_p0 = scmp.ne.s32.totalorder %s4023_s22, %s4019_s21 }
  0x18   : > { %p4895_p1 = scmp.eq.s32.totalorder %s4169_s25, 0  ;;  %p3008_p2 = scmp.ge.s32.totalorder %s4031_s24, 1 }
  0x19   : > { %p428_p3 = scmp.lt.s32.totalorder %s4031_s24, 3  ;;  %s4033_s28 = smov [#allocation7]  }
  0x1a   : > { %p4178_p5 = por %p4895_p1, %p318_p0  ;;  %s457_s29 = sshll.u32 %s4033_s28, 4  ;;  %s458_s29 = int_to_ptr.vmem [resolvable:$true] %s457_s29 }
  0x1b   : > { %p4182_p6 = pnand %p3008_p2, %p428_p3  ;;  %s4034_s30 = smov [#allocation10]  }
  0x1c   : > { %s4929_s26 = scalar_select %p4178_p5, 1, 0 }
  0x1d   : > { %s4931_s27 = scalar_select %p4182_p6, 1, 0 }
  0x1e   : > { %4930 = sst [smem:[#allocation28_spill]] %s4929_s26  ;;  %p3439_p7 = pneg %p4182_p6 }
  0x1f   : > { %s487_s0 = sshll.u32 %s4034_s30, 4  ;;  %s4933_s2 = sld [smem:[#allocation32_spill]]  ;;  %s4194_s0 = int_to_ptr.vmem [resolvable:$true] %s487_s0 }
  0x20   : > { %p4190_p8 = pnand %p3439_p7, %p4895_p1 }
  0x22   : > { %s4932_s17 = scalar_select %p4190_p8, 1, 0 }
  0x23   : > { %p4204_p10 = pneg %p4190_p8 }
  0x25   : > { %s3691_s20 = scalar_lea.hbm %s4933_s2, 16 }
  0x26   : > { %p3692_p9 = scmp.ne.s32.totalorder %s4933_s2, %s3691_s20  ;;  %p3698_p13 = scmp.lt.u32.totalorder %s3691_s20, %s4933_s2 }
  0x27   : > { %s4934_s28 = scalar_select %p4204_p10, 1, 0 }
  0x28   : > { %p3694_p11 = pnand %p4204_p10, %p3692_p9 }
  0x2a   : > { %p3695_p12 = pneg %p3694_p11 }
  0x2c   : > { %p3700_p0 = pnand %p3698_p13, %p3695_p12 }
  0x2e   : > { %3703 = shalt.err (!%p3700_p0)
}
  0x2f   : > { %s3704_s18 = scalar_lea.vmem %s458_s29, 16  ;;  %s3711_s16 = scalar_lea.vmem %s458_s29, 32 }
  0x30   : > { %p3705_p2 = scmp.ne.s32.totalorder %s458_s29, %s3704_s18  ;;  %p3712_p4 = scmp.lt.s32.totalorder %s458_s29, %s458_s29 }
  0x31   : > { %p3713_p1 = scmp.lt.s32.totalorder %s3711_s16, %s3704_s18 }
  0x32   : > { %p3707_p3 = pnand %p3705_p2, %p4204_p10 }
  0x33   : > { %p3714_p5 = por %p3713_p1, %p3712_p4 }
  0x34   : > { %p3708_p7 = pneg %p3707_p3 }
  0x36   : > { %p3715_p6 = pnand %p3714_p5, %p3708_p7 }
  0x38   : > { %3718 = shalt.err (!%p3715_p6)
}
  0x39   : > { %3445 = dma.hbm_to_vmem [thread:$0]  (!%p4190_p8), %s4933_s2, 16, %s458_s29, [#allocation8]  }
  0x3a   : > { %s4935_s7 = sld [smem:[#allocation36_spill]] }
  0x40   : > { %s3719_s30 = scalar_lea.hbm %s4935_s7, 256 }
  0x41   : > { %p3720_p9 = scmp.ne.s32.totalorder %s4935_s7, %s3719_s30  ;;  %p3726_p4 = scmp.lt.u32.totalorder %s3719_s30, %s4935_s7 }
  0x43   : > { %p3722_p11 = pnand %p3720_p9, %p4204_p10 }
  0x45   : > { %p3723_p1 = pneg %p3722_p11 }
  0x47   : > { %p3728_p5 = pnand %p3726_p4, %p3723_p1 }
  0x49   : > { %3731 = shalt.err (!%p3728_p5)
}
  0x4a   : > { %s3732_s29 = scalar_lea.vmem %s4194_s0, 256  ;;  %p3740_p0 = scmp.lt.s32.totalorder %s4194_s0, %s4194_s0 }
  0x4b   : > { %p3733_p6 = scmp.ne.s32.totalorder %s4194_s0, %s3732_s29  ;;  %p3741_p2 = scmp.lt.s32.totalorder %s3732_s29, %s3732_s29 }
  0x4d   : > { %p3735_p12 = pnand %p3733_p6, %p4204_p10  ;;  %p3742_p3 = por %p3741_p2, %p3740_p0 }
  0x4f   : > { %p3736_p13 = pneg %p3735_p12 }
  0x51   : > { %p3743_p7 = pnand %p3742_p3, %p3736_p13 }
  0x53   : > { %3746 = shalt.err (!%p3743_p7)
}
  0x54   : > { %s4035_s5 = smov 128   ;;  %s4036_s6 = smov 8  }
  0x55   : > { %3451 = dma.hbm_to_vmem [thread:$0]  (!%p4190_p8), %s4935_s7, 256, %s4194_s0, [#allocation11], %s4035_s5, %s4035_s5, %s4036_s6  }
  0x56   : > { %s4244_s9 = sadd.s32 1, %s4031_s24   ;;  %s305_s20 = sadd.s32 1, %s4027_s23 }
  0x57   : > { %4936 = sst [smem:[#allocation29_spill]] %s4244_s9  ;;  %s302_s30 = ssub.s32 %s4031_s24, %s4244_s9 }
  0x58   : > { %p312_p9 = scmp.ne.s32.totalorder %s4027_s23, %s4023_s22  ;;  %p303_p11 = scmp.eq.s32.totalorder %s302_s30, 0 }
  0x59   : > { %p313_p1 = scmp.eq.s32.totalorder %s4031_s24, 0  ;;  %p3473_p4 = scmp.lt.s32.totalorder %s4031_s24, 2 }
  0x5a   : > { %s4900_s18 = sand.u32 1, %s4031_s24   ;;  %s4258_s29 = sand.u32 1, %s4027_s23  }
  0x5b   : > { %s4255_s16 = scalar_select %p303_p11, %s4027_s23, %s305_s20  }
  0x5c   : > { %p314_p5 = por %p313_p1, %p312_p9  ;;  %s3405_s2 = smul.u32 3072, %s4031_s24 }
  0x5d   : > { %4937 = sst [smem:[#allocation30_spill]] %s4255_s16  ;;  %s3404_s19 = smul.u32 192, %s4258_s29 }
  0x5e   : > { %p4262_p6 = pnand %p3473_p4, %p314_p5  ;;  %s4939_s12 = sld [smem:[#allocation40_spill]] }
  0x5f   : > { %s533_s20 = scalar_lea.vmem [#allocation13], %s3404_s19  ;;  %s4275_s7 = scalar_lea.sflag [#allocation14], %s4900_s18 }
  0x60   : > { %s4938_s0 = scalar_select %p4262_p6, 1, 0 }
  0x61   : > { %s540_s30 = sshll.u32 %s533_s20, 4  ;;  %p4281_p13 = pneg %p4262_p6  ;;  %s4271_s30 = int_to_ptr.vmem [resolvable:$true] %s540_s30 }
  0x63   : > { %s4940_s23 = scalar_select %p4281_p13, 1, 0 }
  0x64   : > { %s4269_s21 = scalar_lea.hbm %s4939_s12, %s3405_s2  ;;  %s3752_s19 = scalar_lea.hbm %s4939_s12, 6144 }
  0x65   : > { %s3747_s16 = scalar_lea.hbm %s4269_s21, 3072  ;;  %p3753_p3 = scmp.lt.u32.totalorder %s4269_s21, %s4939_s12 }
  0x66   : > { %p3748_p12 = scmp.ne.s32.totalorder %s4269_s21, %s3747_s16  ;;  %p3754_p7 = scmp.lt.u32.totalorder %s3752_s19, %s3747_s16 }
  0x67   : > { %p3756_p11 = scmp.lt.u32.totalorder %s3747_s16, %s4269_s21 }
  0x68   : > { %p3750_p0 = pnand %p4281_p13, %p3748_p12  ;;  %p3755_p9 = por %p3754_p7, %p3753_p3 }
  0x6a   : > { %p3751_p2 = pneg %p3750_p0  ;;  %p3757_p1 = por %p3756_p11, %p3755_p9 }
  0x6c   : > { %p3758_p4 = pnand %p3757_p1, %p3751_p2 }
  0x6e   : > { %3761 = shalt.err (!%p3758_p4)
}
  0x6f   : > { %s3762_s18 = scalar_lea.vmem %s4271_s30, 3072  ;;  %s4037_s2 = smov [#allocation13]  }
  0x70   : > { %p3763_p5 = scmp.ne.s32.totalorder %s4271_s30, %s3762_s18  ;;  %s3767_s5 = sshll.u32 %s4037_s2, 4  ;;  %s3768_s5 = int_to_ptr.vmem [resolvable:$false] %s3767_s5 }
  0x71   : > { %s3769_s6 = scalar_lea.vmem %s3768_s5, 6144  ;;  %p3770_p8 = scmp.lt.s32.totalorder %s4271_s30, %s3768_s5 }
  0x72   : > { %p3765_p12 = pnand %p3763_p5, %p4281_p13  ;;  %p3771_p10 = scmp.lt.s32.totalorder %s3769_s6, %s3762_s18 }
  0x74   : > { %p3766_p0 = pneg %p3765_p12  ;;  %p3772_p3 = por %p3771_p10, %p3770_p8 }
  0x76   : > { %p3773_p7 = pnand %p3772_p3, %p3766_p0 }
  0x78   : > { %3776 = shalt.err (!%p3773_p7)
}
  0x79   : > { %s4038_s16 = smov 192   ;;  %s4039_s19 = smov 12  }
  0x7a   : > { %3458 = dma.hbm_to_vmem [thread:$0]  (!%p4262_p6), %s4269_s21, 3072, %s4271_s30, %s4275_s7, %s4038_s16, %s4038_s16, %s4039_s19  }
  0x7b   : > { %s3019_s20 = sshll.u32 %s4258_s29, 9  ;;  %s3205_s2 = sshll.u32 %s4031_s24, 13 }
  0x7c   : > { %s4941_s14 = sld [smem:[#allocation41_spill]]  ;;  %s575_s6 = scalar_lea.vmem [#allocation16], %s3019_s20 }
  0x7d   : > { %s582_s9 = sshll.u32 %s575_s6, 4  ;;  %s4942_s4 = sand.u32 1, %s4031_s24   ;;  %s4312_s9 = int_to_ptr.vmem [resolvable:$true] %s582_s9 }
  0x7e   : > { %s4316_s11 = scalar_lea.sflag [#allocation17], %s4942_s4 }
  0x82   : > { %s4310_s18 = scalar_lea.hbm %s4941_s14, %s3205_s2  ;;  %s3782_s30 = scalar_lea.hbm %s4941_s14, 16384 }
  0x83   : > { %s3777_s10 = scalar_lea.hbm %s4310_s18, 8192  ;;  %p3783_p9 = scmp.lt.u32.totalorder %s4310_s18, %s4941_s14 }
  0x84   : > { %p3778_p8 = scmp.ne.s32.totalorder %s4310_s18, %s3777_s10  ;;  %p3784_p11 = scmp.lt.u32.totalorder %s3782_s30, %s3777_s10 }
  0x85   : > { %p3786_p4 = scmp.lt.u32.totalorder %s3777_s10, %s4310_s18 }
  0x86   : > { %p3780_p10 = pnand %p3778_p8, %p4281_p13  ;;  %p3785_p1 = por %p3784_p11, %p3783_p9 }
  0x88   : > { %p3781_p2 = pneg %p3780_p10  ;;  %p3787_p5 = por %p3786_p4, %p3785_p1 }
  0x8a   : > { %p3788_p12 = pnand %p3787_p5, %p3781_p2 }
  0x8c   : > { %3791 = shalt.err (!%p3788_p12)
}
  0x8d   : > { %s3792_s4 = scalar_lea.vmem %s4312_s9, 8192  ;;  %s4040_s20 = smov [#allocation16]  }
  0x8e   : > { %p3793_p0 = scmp.ne.s32.totalorder %s4312_s9, %s3792_s4  ;;  %s3797_s2 = sshll.u32 %s4040_s20, 4  ;;  %s3798_s2 = int_to_ptr.vmem [resolvable:$false] %s3797_s2 }
  0x8f   : > { %s3799_s5 = scalar_lea.vmem %s3798_s2, 16384  ;;  %p3800_p8 = scmp.lt.s32.totalorder %s4312_s9, %s3798_s2 }
  0x90   : > { %p3795_p3 = pnand %p3793_p0, %p4281_p13  ;;  %p3801_p10 = scmp.lt.s32.totalorder %s3799_s5, %s3792_s4 }
  0x92   : > { %p3796_p7 = pneg %p3795_p3  ;;  %p3802_p9 = por %p3801_p10, %p3800_p8 }
  0x94   : > { %p3803_p11 = pnand %p3802_p9, %p3796_p7 }
  0x96   : > { %3806 = shalt.err (!%p3803_p11)
}
  0x97   : > { %s4041_s10 = smov 512   ;;  %s4042_s6 = smov 32  }
  0x98   : > { %3464 = dma.hbm_to_vmem [thread:$0]  (!%p4262_p6), %s4310_s18, 8192, %s4312_s9, %s4316_s11, %s4041_s10, %s4041_s10, %s4042_s6  }
  0x99   : > { %s4043_s21 = smov [#allocation4]   ;;  %s3807_s19 = scalar_lea.hbm %s4877_s1, 1024 }
  0x9a   : > { %s443_s12 = sshll.u32 %s4043_s21, 4  ;;  %p3808_p2 = scmp.ne.s32.totalorder %s4877_s1, %s3807_s19  ;;  %s444_s12 = int_to_ptr.vmem [resolvable:$true] %s443_s12 }
  0x9b   : > { %p4943_p1 = scmp.ne.s32.totalorder %s4934_s28, 0  ;;  %p3814_p12 = scmp.lt.u32.totalorder %s3807_s19, %s4877_s1 }
  0x9d   : > { %p3810_p4 = pnand %p3808_p2, %p4943_p1 }
  0x9f   : > { %p3811_p5 = pneg %p3810_p4 }
  0xa1   : > { %p3816_p0 = pnand %p3814_p12, %p3811_p5 }
  0xa3   : > { %3819 = shalt.err (!%p3816_p0)
}
  0xa4   : > { %s3820_s9 = scalar_lea.vmem %s444_s12, 1024  ;;  %p3828_p10 = scmp.lt.s32.totalorder %s444_s12, %s444_s12 }
  0xa5   : > { %p3821_p3 = scmp.ne.s32.totalorder %s444_s12, %s3820_s9  ;;  %p3829_p9 = scmp.lt.s32.totalorder %s3820_s9, %s3820_s9 }
  0xa7   : > { %p3823_p7 = pnand %p3821_p3, %p4943_p1  ;;  %p3830_p11 = por %p3829_p9, %p3828_p10 }
  0xa9   : > { %p3824_p8 = pneg %p3823_p7 }
  0xab   : > { %p3831_p6 = pnand %p3830_p11, %p3824_p8 }
  0xad   : > { %3834 = shalt.err (!%p3831_p6)
}
  0xae   : > { %s4044_s18 = smov 64   ;;  %s4045_s10 = smov 4  }
  0xaf   : > { %p4944_p2 = scmp.ne.s32.totalorder %s4932_s17, 0  ;;  %s4046_s30 = smov [#allocation9]  }
  0xb0   : > { %s468_s16 = sshll.u32 %s4046_s30, 4  ;;  %s4047_s19 = smov [#allocation12]   ;;  %s469_s16 = int_to_ptr.vmem [resolvable:$true] %s468_s16 }
  0xb1   : > { %3442 = dma.hbm_to_vmem [thread:$0]  (!%p4944_p2), %s4877_s1, 1024, %s444_s12, [#allocation5], %s4044_s18, %s4044_s18, %s4045_s10  }
  0xb2   : > { %s500_s4 = sshll.u32 %s4047_s19, 4  ;;  %s3835_s5 = scalar_lea.hbm %s4879_s3, 16  ;;  %s501_s4 = int_to_ptr.vmem [resolvable:$true] %s500_s4 }
  0xb3   : > { %p3836_p6 = scmp.ne.s32.totalorder %s4879_s3, %s3835_s5  ;;  %p3842_p12 = scmp.lt.u32.totalorder %s3835_s5, %s4879_s3 }
  0xb5   : > { %p3838_p4 = pnand %p3836_p6, %p4943_p1 }
  0xb7   : > { %p3839_p5 = pneg %p3838_p4 }
  0xb9   : > { %p3844_p0 = pnand %p3842_p12, %p3839_p5 }
  0xbb   : > { %3847 = shalt.err (!%p3844_p0)
}
  0xbc   : > { %s3848_s12 = scalar_lea.vmem %s469_s16, 16  ;;  %s3855_s6 = scalar_lea.vmem %s469_s16, 32 }
  0xbd   : > { %p3849_p3 = scmp.ne.s32.totalorder %s469_s16, %s3848_s12  ;;  %p3856_p10 = scmp.lt.s32.totalorder %s469_s16, %s469_s16 }
  0xbe   : > { %p3857_p9 = scmp.lt.s32.totalorder %s3855_s6, %s3848_s12 }
  0xbf   : > { %p3851_p7 = pnand %p3849_p3, %p4943_p1 }
  0xc0   : > { %p3858_p11 = por %p3857_p9, %p3856_p10 }
  0xc1   : > { %p3852_p8 = pneg %p3851_p7 }
  0xc3   : > { %p3859_p13 = pnand %p3858_p11, %p3852_p8 }
  0xc5   : > { %3862 = shalt.err (!%p3859_p13)
}
  0xc6   : > { %3448 = dma.hbm_to_vmem [thread:$0]  (!%p4944_p2), %s4879_s3, 16, %s469_s16, [#allocation8]  }
  0xc7   : > { %s3016_s22 = sshll.u32 %s4258_s29, 6  ;;  %s3863_s19 = scalar_lea.hbm %s4884_s8, 1024 }
  0xc8   : > { %p3864_p6 = scmp.ne.s32.totalorder %s4884_s8, %s3863_s19  ;;  %p3870_p5 = scmp.lt.u32.totalorder %s3863_s19, %s4884_s8 }
  0xca   : > { %p3866_p13 = pnand %p3864_p6, %p4943_p1 }
  0xcc   : > { %p3867_p4 = pneg %p3866_p13 }
  0xce   : > { %p3872_p12 = pnand %p3870_p5, %p3867_p4 }
  0xd0   : > { %3875 = shalt.err (!%p3872_p12)
}
  0xd1   : > { %s3876_s16 = scalar_lea.vmem %s501_s4, 1024  ;;  %p3884_p8 = scmp.lt.s32.totalorder %s501_s4, %s501_s4 }
  0xd2   : > { %p3877_p0 = scmp.ne.s32.totalorder %s501_s4, %s3876_s16  ;;  %p3885_p10 = scmp.lt.s32.totalorder %s3876_s16, %s3876_s16 }
  0xd4   : > { %p3879_p3 = pnand %p3877_p0, %p4943_p1  ;;  %p3886_p9 = por %p3885_p10, %p3884_p8 }
  0xd6   : > { %p3880_p7 = pneg %p3879_p3 }
  0xd8   : > { %p3887_p11 = pnand %p3886_p9, %p3880_p7 }
  0xda   : > { %3890 = shalt.err (!%p3887_p11)
}
  0xdb   : > { %3454 = dma.hbm_to_vmem [thread:$0]  (!%p4944_p2), %s4884_s8, 1024, %s501_s4, [#allocation11], %s4044_s18, %s4044_s18, %s4045_s10  }
  0xdc   : > { %s3204_s28 = sshll.u32 %s4031_s24, 10  ;;  %s554_s17 = scalar_lea.vmem [#allocation15], %s3016_s22 }
  0xdd   : > { %s4405_s26 = scalar_lea.hbm %s4889_s13, %s3204_s28  ;;  %s561_s30 = sshll.u32 %s554_s17, 4  ;;  %s4407_s30 = int_to_ptr.vmem [resolvable:$true] %s561_s30 }
  0xde   : > { %s3022_s19 = sshll.u32 %s4258_s29, 8  ;;  %s3891_s20 = scalar_lea.hbm %s4405_s26, 1024 }
  0xdf   : > { %p3892_p1 = scmp.ne.s32.totalorder %s4405_s26, %s3891_s20  ;;  %p4945_p6 = scmp.ne.s32.totalorder %s4940_s23, 0 }
  0xe0   : > { %s3896_s5 = scalar_lea.hbm %s4889_s13, 2048  ;;  %p3897_p4 = scmp.lt.u32.totalorder %s4405_s26, %s4889_s13 }
  0xe1   : > { %p3894_p13 = pnand %p3892_p1, %p4945_p6  ;;  %p3898_p5 = scmp.lt.u32.totalorder %s3896_s5, %s3891_s20 }
  0xe2   : > { %p3900_p0 = scmp.lt.u32.totalorder %s3891_s20, %s4405_s26 }
  0xe3   : > { %p3895_p2 = pneg %p3894_p13  ;;  %p3899_p12 = por %p3898_p5, %p3897_p4 }
  0xe5   : > { %p3901_p3 = por %p3900_p0, %p3899_p12 }
  0xe7   : > { %p3902_p7 = pnand %p3901_p3, %p3895_p2 }
  0xe9   : > { %3905 = shalt.err (!%p3902_p7)
}
  0xea   : > { %s3906_s22 = scalar_lea.vmem %s4407_s30, 1024  ;;  %s4048_s12 = smov [#allocation15]  }
  0xeb   : > { %p3907_p8 = scmp.ne.s32.totalorder %s4407_s30, %s3906_s22  ;;  %s3911_s6 = sshll.u32 %s4048_s12, 4  ;;  %s3912_s6 = int_to_ptr.vmem [resolvable:$false] %s3911_s6 }
  0xec   : > { %s3913_s28 = scalar_lea.vmem %s3912_s6, 2048  ;;  %p3914_p11 = scmp.lt.s32.totalorder %s4407_s30, %s3912_s6 }
  0xed   : > { %p3909_p10 = pnand %p3907_p8, %p4945_p6  ;;  %p3915_p1 = scmp.lt.s32.totalorder %s3913_s28, %s3906_s22 }
  0xef   : > { %p3910_p9 = pneg %p3909_p10  ;;  %p3916_p13 = por %p3915_p1, %p3914_p11 }
  0xf1   : > { %p3917_p4 = pnand %p3916_p13, %p3910_p9 }
  0xf3   : > { %3920 = shalt.err (!%p3917_p4)
}
  0xf4   : > { %p4946_p2 = scmp.ne.s32.totalorder %s4938_s0, 0  ;;  %s3206_s14 = sshll.u32 %s4031_s24, 12 }
  0xf5   : > { %s4439_s20 = scalar_lea.hbm %s4891_s15, %s3206_s14  ;;  %s596_s4 = scalar_lea.vmem [#allocation18], %s3022_s19 }
  0xf6   : > { %3461 = dma.hbm_to_vmem [thread:$0]  (!%p4946_p2), %s4405_s26, 1024, %s4407_s30, %s4275_s7, %s4044_s18, %s4044_s18, %s4045_s10  }
  0xf7   : > { %s603_s2 = sshll.u32 %s596_s4, 4  ;;  %s3921_s5 = scalar_lea.hbm %s4439_s20, 4096  ;;  %s4443_s2 = int_to_ptr.vmem [resolvable:$true] %s603_s2 }
  0xf8   : > { %p3922_p5 = scmp.ne.s32.totalorder %s4439_s20, %s3921_s5  ;;  %s3926_s26 = scalar_lea.hbm %s4891_s15, 8192 }
  0xf9   : > { %p3927_p3 = scmp.lt.u32.totalorder %s4439_s20, %s4891_s15  ;;  %p3928_p7 = scmp.lt.u32.totalorder %s3926_s26, %s3921_s5 }
  0xfa   : > { %p3924_p12 = pnand %p3922_p5, %p4945_p6  ;;  %p3930_p10 = scmp.lt.u32.totalorder %s3921_s5, %s4439_s20 }
  0xfb   : > { %p3929_p8 = por %p3928_p7, %p3927_p3 }
  0xfc   : > { %p3925_p0 = pneg %p3924_p12 }
  0xfd   : > { %p3931_p9 = por %p3930_p10, %p3929_p8 }
  0xff   : > { %p3932_p11 = pnand %p3931_p9, %p3925_p0 }
 0x101   : > { %3935 = shalt.err (!%p3932_p11)
}
 0x102   : > { %s3936_s29 = scalar_lea.vmem %s4443_s2, 4096  ;;  %s4049_s19 = smov [#allocation18]  }
 0x103   : > { %p3937_p1 = scmp.ne.s32.totalorder %s4443_s2, %s3936_s29  ;;  %s3941_s16 = sshll.u32 %s4049_s19, 4  ;;  %s3942_s16 = int_to_ptr.vmem [resolvable:$false] %s3941_s16 }
 0x104   : > { %s3943_s22 = scalar_lea.vmem %s3942_s16, 8192  ;;  %p3944_p5 = scmp.lt.s32.totalorder %s4443_s2, %s3942_s16 }
 0x105   : > { %p3939_p13 = pnand %p3937_p1, %p4945_p6  ;;  %p3945_p12 = scmp.lt.s32.totalorder %s3943_s22, %s3936_s29 }
 0x107   : > { %p3940_p4 = pneg %p3939_p13  ;;  %p3946_p3 = por %p3945_p12, %p3944_p5 }
 0x109   : > { %p3947_p7 = pnand %p3946_p3, %p3940_p4 }
 0x10b   : > { %3950 = shalt.err (!%p3947_p7)
}
 0x10c   : > { %3467 = dma.hbm_to_vmem [thread:$0]  (!%p4946_p2), %s4439_s20, 4096, %s4443_s2, %s4316_s11, %s4044_s18, %s4044_s18, %s4045_s10  }
 0x10d   : > { %p4947_p6 = scmp.ne.s32.totalorder %s4931_s27, 0 }
 0x10e   : > { %p4948_p0 = scmp.eq.s32.totalorder (!%p4947_p6), %s4169_s25, 0 }
 0x10f   : > { %615 = sbr.rel (%p4947_p6) target bundleno = 3355 (0xd1b), region = 84 }
 0x116   : > { %3994 = dma.done.wait (%p4948_p0), [#allocation5], 1024   ;;  %p4949_p8 = pmov %p4948_p0 }
 0x117   : > { %p4950_p10 = pmov %p4948_p0 }
 0x118   : > { %3996 = vsyncadd (%p4949_p8), [#allocation5], 4294966272 }
 0x119   : > { %3998 = dma.done.wait (%p4950_p10), [#allocation8], 32   ;;  %p4951_p9 = pmov %p4948_p0 }
 0x11a   : > { %p4952_p11 = pmov %p4948_p0 }
 0x11b   : > { %4000 = vsyncadd (%p4951_p9), [#allocation8], 4294967264 }
 0x11c   : > { %4002 = dma.done.wait (%p4952_p11), [#allocation11], 1280   ;;  %p4953_p2 = pmov %p4948_p0 }
 0x11d   : > { %s4954_s11 = sld [smem:[#allocation26_spill]]  ;;  %s4955_s23 = sld [smem:[#allocation28_spill]] }
 0x11e   : > { %4004 = vsyncadd (%p4953_p2), [#allocation11], 4294966016  ;;  %s637_s27 = sand.u32 1, %s4169_s25  }
 0x11f   : > { %s638_s10 = scalar_lea.sflag [#allocation14], %s637_s27 }
 0x123   : > { %s639_s0 = sand.u32 1, %s4954_s11   ;;  %p4956_p1 = scmp.ne.s32.totalorder %s4955_s23, 0 }
 0x124   : > { %s3406_s18 = smul.u32 192, %s639_s0 }
 0x126   : > { %s4486_s12 = scalar_lea.vmem [#allocation13], %s3406_s18 }
 0x127   : > { %4006 = dma.done.wait (%p4956_p1), %s638_s10, 4096  }
 0x128   : > { %4008 = vsyncadd (%p4956_p1), %s638_s10, 4294963200  ;;  %s3031_s6 = sshll.u32 %s639_s0, 6  ;;  %s3032_s28 = sshll.u32 %s639_s0, 9 }
 0x129   : > { %s4492_s14 = scalar_lea.vmem [#allocation15], %s3031_s6  ;;  %s656_s21 = scalar_lea.sflag [#allocation17], %s637_s27 }
 0x12a   : > { %s4494_s17 = scalar_lea.vmem [#allocation16], %s3032_s28 }
 0x12b   : > { %4010 = dma.done.wait (%p4956_p1), %s656_s21, 12288  }
 0x12c   : > { %4012 = vsyncadd (%p4956_p1), %s656_s21, 4294955008  ;;  %s3033_s20 = sshll.u32 %s639_s0, 8  ;;  %p733_p13 = scmp.lt.s32.totalorder %s4169_s25, 1 }
 0x12d   : > { %s4957_s7 = sld [smem:[#allocation38_spill]]  ;;  %s4958_s9 = sld [smem:[#allocation39_spill]] }
 0x12e   : > { %s4502_s4 = scalar_select %p733_p13, %s4169_s25, 1 }
 0x12f   : > { %s4512_s19 = scalar_lea.vmem [#allocation18], %s3033_s20  ;;  %p4959_p4 = scmp.ne.s32.totalorder %s4169_s25, 0 }
 0x130   : > { %v3543_v0 = vld [vmem:[#allocation4] sm:$0xff] (!%p4959_p4)   ;;  %v4050_v1 = vmov (!%p4959_p4), 0.0   ;;  %v3544_v2 = vld [vmem:[#allocation4 + $0x8] sm:$0xff] (!%p4959_p4)   ;;  %vm4051_vm0 = vmmov (!%p4959_p4), 0   ;;  %v3545_v3 = vld [vmem:[#allocation4 + $0x10] sm:$0xff] (!%p4959_p4)   ;;  %s4960_s11 = sld [smem:[#allocation31_spill]] (!%p4959_p4) }
 0x131   : > { %743 = sbr.rel (%p4959_p4) target bundleno = 719 (0x2cf), region = 124  ;;  %3296 = vmatprep.subr.bf16.mxu0 (!%p4959_p4), %v4050_v1  ;;  %3312 = vmatprep.mubr.msk.bf16.mxu0 (!%p4959_p4), %vm4051_vm0, %v4050_v1  ;;  %v3546_v4 = vld [vmem:[#allocation4 + $0x18] sm:$0xff] (!%p4959_p4)   ;;  %v3547_v5 = vld [vmem:[#allocation4 + $0x20] sm:$0xff] (!%p4959_p4)   ;;  %v3548_v6 = vld [vmem:[#allocation4 + $0x28] sm:$0xff] (!%p4959_p4)   ;;  %s4961_s10 = sld [smem:[#allocation33_spill]] (!%p4959_p4)  ;;  %v4052_v13 = vmov (!%p4959_p4), 0  }
 0x132   : > { %3297 = vmatpush3.bf16.msra.mxu0 (!%p4959_p4), %v3543_v0  ;;  %v3549_v7 = vld [vmem:[#allocation4 + $0x30] sm:$0xff] (!%p4959_p4)   ;;  %v3550_v8 = vld [vmem:[#allocation4 + $0x38] sm:$0xff] (!%p4959_p4)   ;;  %3541 = vset.pattern.permute.xlu1 (!%p4959_p4), %v4052_v13  ;;  %v3035_v15 = vld [vmem:[#allocation7] ss:$0 sm:$0xff] (!%p4959_p4)  ;;  %s4962_s2 = sld [smem:[#allocation34_spill]] (!%p4959_p4)  ;;  %vm902_vm3 = vcmask (!%p4959_p4), 130048  }
 0x133   : > { %s735_s24 = scalar_lea.vmem %s4957_s7, %s4502_s4  ;;  %s738_s29 = scalar_lea.vmem %s4958_s9, %s4502_s4  ;;  %3298 = vmatprep.subr.bf16.mxu0 (!%p4959_p4), %v4050_v1  ;;  %3542 = vset.pattern.permute.xlu0 (!%p4959_p4), %v4052_v13  ;;  %v4053_v27 = vmov (!%p4959_p4), -1e+30   ;;  %v3044_v37 = vld [vmem:[#allocation9] ss:$0 sm:$0xff] (!%p4959_p4) }
 0x136   : > { %3299 = vmatpush3.bf16.msra.mxu0 (!%p4959_p4), %v3544_v2  ;;  %v744_v9 = vld [vmem:[%s4960_s11] sm:$0xff] (!%p4959_p4)  ;;  %v745_v10 = vld [vmem:[%s4960_s11 + $0x8] sm:$0xff] (!%p4959_p4) }
 0x137   : > { %3300 = vmatprep.subr.bf16.mxu0 (!%p4959_p4), %v4050_v1  ;;  %v746_v11 = vpack.c.bf16 (!%p4959_p4), %v745_v10, %v744_v9  ;;  %v885_v12 = vld [vmem:[%s4961_s10] sm:$0xff] (!%p4959_p4)  ;;  %v886_v14 = vld [vmem:[%s4961_s10 + $0x8] sm:$0xff] (!%p4959_p4) }
 0x138   : > { %889 = vperm.xlu1 %3541, %v885_v12   ;;  %v3045_v25 = vld [vmem:[%s4962_s2] ss:$0 sm:$0xff] }
 0x13a   : > { %3301 = vmatpush3.bf16.msra.mxu0 %v3545_v3 }
 0x13b   : > { %3302 = vmatprep.subr.bf16.mxu0 %v4050_v1 }
 0x13c   : > { %892 = vperm.xlu1 %3541, %v886_v14  }
 0x13e   : > { %3303 = vmatpush3.bf16.msra.mxu0 %v3546_v4 }
 0x13f   : > { %3304 = vmatprep.subr.bf16.mxu0 %v4050_v1 }
 0x142   : > { %3305 = vmatpush3.bf16.msra.mxu0 %v3547_v5 }
 0x143   : > { %3306 = vmatprep.subr.bf16.mxu0 %v4050_v1 }
 0x146   : > { %3307 = vmatpush3.bf16.msra.mxu0 %v3548_v6 }
 0x147   : > { %3308 = vmatprep.subr.bf16.mxu0 %v4050_v1 }
 0x14a   : > { %3309 = vmatpush3.bf16.msra.mxu0 %v3549_v7 }
 0x14b   : > { %3310 = vmatprep.subr.bf16.mxu0 %v4050_v1 }
 0x14e   : > { %3311 = vmatpush3.bf16.msra.mxu0 %v3550_v8 }
 0x151   : > { %3313 = vmatmul.mubr.bf16.vlgmr.msra.gmra.mrb[0].mxu0 %v746_v11 }
 0x1b7   : > { %v890_v24 = vpop.permute.xlu1 %889 }
 0x1b8   : > { %vm898_vm1 = vcmp.eq.s32.totalorder %v890_v24, %v3045_v25 }
 0x1b9   : > { %v900_v28 = vsel %vm898_vm1, 0.0, %v4053_v27 }
 0x1ba   : > { %903 = vst.msk [vmem:[#allocation3] sm:$0xff] %vm902_vm3, %v900_v28 }
 0x1bb   : > { %v893_v26 = vpop.permute.xlu1 %892 }
 0x1bc   : > { %vm899_vm2 = vcmp.eq.s32.totalorder %v893_v26, %v3045_v25 }
 0x1bd   : > { %v901_v29 = vsel %vm899_vm2, 0.0, %v4053_v27 }
 0x1be   : > { %904 = vst.msk [vmem:[#allocation3 + $0x8] sm:$0xff] %vm902_vm3, %v901_v29 }
 0x224   : > { %v852_v16 = vpop.f32.mrb[0].mxu0 }
 0x225   : > { %v853_v17 = vadd.f32 %v3035_v15, %v852_v16  ;;  %v3314_v18 = vpop.f32.mrb[1].mxu0 }
 0x226   : > { %v855_v19 = vpop.f32.mrb[2].mxu0 }
 0x227   : > { %v856_v20 = vadd.f32 %v3035_v15, %v855_v19  ;;  %v3315_v21 = vpop.f32.mrb[3].mxu0  ;;  %v860_v22 = vmul.f32 %v853_v17, %v853_v17 }
 0x229   : > { %862 = vadd.xlane.f32.xlu0 %v860_v22  ;;  %v861_v23 = vmul.f32 %v856_v20, %v856_v20 }
 0x22d   : > { %864 = vadd.xlane.f32.xlu0 %v861_v23 }
 0x2b6   : > { %v863_v30 = vpop.xlane.xlu0 %862 }
 0x2b7   : > { %v867_v31 = vmul.f32 0.0078125, %v863_v30 }
 0x2b9   : > { %v869_v32 = vadd.f32 1e-06, %v867_v31 }
 0x2ba   : > { %v865_v33 = vpop.xlane.xlu0 %864 }
 0x2bb   : > { %3551 = vrsqrt.f32 %v869_v32  ;;  %v868_v34 = vmul.f32 0.0078125, %v865_v33 }
 0x2bd   : > { %v870_v35 = vadd.f32 1e-06, %v868_v34 }
 0x2bf   : > { %3553 = vrsqrt.f32 %v870_v35 }
 0x2c5   : > { %v3552_v36 = vpop.eup %3551 }
 0x2c6   : > { %v873_v38 = vmul.f32 %v3552_v36, %v853_v17 }
 0x2c8   : > { %v881_v39 = vmul.f32 %v3044_v37, %v873_v38 }
 0x2c9   : > { %v3554_v40 = vpop.eup %3553 }
 0x2ca   : > { %883 = vst [vmem:[#allocation2] sm:$0xff] %v881_v39  ;;  %v874_v41 = vmul.f32 %v3554_v40, %v856_v20 }
 0x2cc   : > { %v882_v42 = vmul.f32 %v3044_v37, %v874_v41 }
 0x2ce   : > { %884 = vst [vmem:[#allocation2 + $0x8] sm:$0xff] %v882_v42 }
 0x2cf PF: > { %v3555_v46 = vld [vmem:[%s4486_s12 + $0x4] ss:$12 sps:$4 sm:$0xff]   ;;  %v4054_v47 = vmov 0.0   ;;  %v3557_v48 = vld [vmem:[%s4486_s12] ss:$12 sps:$4 sm:$0xff]   ;;  %v4055_v5 = vmov 0  }
 0x2d0   : > { %3316 = vmatprep.subr.bf16.mxu1 %v4054_v47  ;;  %v3558_v49 = vld [vmem:[%s4486_s12 + $0x8] ss:$12 sps:$4 sm:$0xff]   ;;  %1098 = vmatprep.subr.bf16.mxu0 %v3555_v46  ;;  %v3561_v52 = vld [vmem:[%s4486_s12 + $0x18] ss:$12 sps:$4 sm:$0xff]   ;;  %v3562_v53 = vld [vmem:[%s4486_s12 + $0x20] ss:$12 sps:$4 sm:$0xff]  }
 0x2d1   : > { %v4531_v43 = vld [vmem:[#allocation2] sm:$0xff]  ;;  %v3559_v51 = vld [vmem:[%s4486_s12 + $0x1c] ss:$12 sps:$4 sm:$0xff]   ;;  %1099 = vmatpush1.bf16.msra.mxu0 %v3557_v48  ;;  %3317 = vmatpush3.bf16.msra.mxu1 %v3558_v49  ;;  %v3563_v54 = vld [vmem:[%s4486_s12 + $0x34] ss:$12 sps:$4 sm:$0xff]   ;;  %vm4056_vm4 = vmmov 0  }
 0x2d2   : > { %v914_v45 = vmul.f32 %v4531_v43, %v4531_v43  ;;  %1100 = vmatprep.subr.bf16.mxu0 %v3559_v51  ;;  %3318 = vmatprep.subr.bf16.mxu1 %v4054_v47  ;;  %v3565_v55 = vld [vmem:[%s4486_s12 + $0x30] ss:$12 sps:$4 sm:$0xff]   ;;  %v3566_v56 = vld [vmem:[%s4486_s12 + $0x38] ss:$12 sps:$4 sm:$0xff]   ;;  %v3569_v58 = vld [vmem:[%s4486_s12 + $0x48] ss:$12 sps:$4 sm:$0xff]  }
 0x2d3   : > { %v3567_v57 = vld [vmem:[%s4486_s12 + $0x4c] ss:$12 sps:$4 sm:$0xff]   ;;  %v3570_v59 = vld [vmem:[%s4486_s12 + $0x50] ss:$12 sps:$4 sm:$0xff]   ;;  %v3574_v62 = vld [vmem:[%s4486_s12 + $0x68] ss:$12 sps:$4 sm:$0xff]   ;;  %1130 = vmatprep.mubr.bf16.mxu0 %v4055_v5  ;;  %3332 = vmatprep.mubr.msk.bf16.mxu1 %vm4056_vm4, %v4054_v47 }
 0x2d4   : > { %916 = vadd.xlane.f32.xlu0 %v914_v45  ;;  %v3571_v60 = vld [vmem:[%s4486_s12 + $0x64] ss:$12 sps:$4 sm:$0xff]   ;;  %v3573_v61 = vld [vmem:[%s4486_s12 + $0x60] ss:$12 sps:$4 sm:$0xff]   ;;  %v3575_v63 = vld [vmem:[%s4486_s12 + $0x7c] ss:$12 sps:$4 sm:$0xff]  }
 0x2d5   : > { %v4533_v44 = vld [vmem:[#allocation2 + $0x8] sm:$0xff]  ;;  %1101 = vmatpush1.bf16.msra.mxu0 %v3561_v52  ;;  %3319 = vmatpush3.bf16.msra.mxu1 %v3562_v53  ;;  %v3578_v1 = vld [vmem:[%s4486_s12 + $0x80] ss:$12 sps:$4 sm:$0xff]   ;;  %v3581_v3 = vld [vmem:[%s4486_s12 + $0x90] ss:$12 sps:$4 sm:$0xff]   ;;  %s4964_s9 = sld [smem:[#allocation35_spill]] }
 0x2d6   : > { %v915_v50 = vmul.f32 %v4533_v44, %v4533_v44  ;;  %3320 = vmatprep.subr.bf16.mxu1 %v4054_v47  ;;  %1102 = vmatprep.subr.bf16.mxu0 %v3563_v54  ;;  %v3577_v0 = vld [vmem:[%s4486_s12 + $0x78] ss:$12 sps:$4 sm:$0xff]   ;;  %v3579_v2 = vld [vmem:[%s4486_s12 + $0x94] ss:$12 sps:$4 sm:$0xff]   ;;  %v3586_v8 = vld [vmem:[%s4486_s12 + $0xb0] ss:$12 sps:$4 sm:$0xff]  }
 0x2d7   : > { %v3582_v4 = vld [vmem:[%s4486_s12 + $0x98] ss:$12 sps:$4 sm:$0xff]   ;;  %v3585_v7 = vld [vmem:[%s4486_s12 + $0xa8] ss:$12 sps:$4 sm:$0xff]   ;;  %v3046_v18 = vld [vmem:[%s735_s24] ss:$0 sm:$0xff] }
 0x2d8   : > { %918 = vadd.xlane.f32.xlu0 %v915_v50  ;;  %v3583_v6 = vld [vmem:[%s4486_s12 + $0xac] ss:$12 sps:$4 sm:$0xff]   ;;  %s4057_s22 = smov 96   ;;  %s4058_s23 = smov 32   ;;  %vm1201_vm5 = vcmask 261120   ;;  %v4630_v45 = vld [vmem:[#allocation10] sm:$0xff] }
 0x2d9   : > { %1103 = vmatpush1.bf16.msra.mxu0 %v3565_v55  ;;  %3321 = vmatpush3.bf16.msra.mxu1 %v3566_v56  ;;  %s4059_s27 = smov 64   ;;  %v912_v53 = vld [vmem:[#allocation10 + $0x8] sm:$0xff]  ;;  %vm1238_vm6 = vcmask 523264   ;;  %vm1290_vm7 = vcmask 130048   ;;  %p3190_p5 = scmp.ne.s32.totalorder %s4169_s25, 1 }
 0x2da   : > { %3322 = vmatprep.subr.bf16.mxu1 %v4054_v47  ;;  %1104 = vmatprep.subr.bf16.mxu0 %v3567_v57  ;;  %vm4061_vm8 = vmmov (!%p3190_p5), 0  }
 0x2db   : > { %v909_v23 = vld [vmem:[%s4964_s9] sm:$0xff]  ;;  %v910_v26 = vld [vmem:[%s4964_s9 + $0x8] sm:$0xff] }
 0x2dd   : > { %1105 = vmatpush1.bf16.msra.mxu0 %v3569_v58  ;;  %3323 = vmatpush3.bf16.msra.mxu1 %v3570_v59 }
 0x2de   : > { %3324 = vmatprep.subr.bf16.mxu1 %v4054_v47  ;;  %1106 = vmatprep.subr.bf16.mxu0 %v3571_v60 }
 0x2e1   : > { %1107 = vmatpush1.bf16.msra.mxu0 %v3573_v61  ;;  %3325 = vmatpush3.bf16.msra.mxu1 %v3574_v62 }
 0x2e2   : > { %1108 = vmatprep.subr.bf16.mxu0 %v3575_v63  ;;  %3326 = vmatprep.subr.bf16.mxu1 %v4054_v47 }
 0x2e5   : > { %1109 = vmatpush1.bf16.msra.mxu0 %v3577_v0  ;;  %3327 = vmatpush3.bf16.msra.mxu1 %v3578_v1 }
 0x2e6   : > { %1110 = vmatprep.subr.bf16.mxu0 %v3579_v2  ;;  %3328 = vmatprep.subr.bf16.mxu1 %v4054_v47 }
 0x2e9   : > { %1111 = vmatpush1.bf16.msra.mxu0 %v3581_v3  ;;  %3329 = vmatpush3.bf16.msra.mxu1 %v3582_v4 }
 0x2ea   : > { %1112 = vmatprep.subr.bf16.mxu0 %v3583_v6  ;;  %3330 = vmatprep.subr.bf16.mxu1 %v4054_v47 }
 0x2ed   : > { %1113 = vmatpush1.bf16.msra.mxu0 %v3585_v7  ;;  %3331 = vmatpush3.bf16.msra.mxu1 %v3586_v8 }
 0x2ee   : > { %3342 = vmatprep.subr.bf16.mxu1 %v4054_v47  ;;  %3336 = vmatprep.subr.bf16.mxu0 %v4054_v47 }
 0x361   : > { %v917_v9 = vpop.xlane.xlu0 %916 }
 0x362   : > { %v921_v10 = vmul.f32 0.0078125, %v917_v9 }
 0x364   : > { %v923_v11 = vadd.f32 1e-06, %v921_v10 }
 0x365   : > { %v919_v12 = vpop.xlane.xlu0 %918 }
 0x366   : > { %3627 = vrsqrt.f32 %v923_v11  ;;  %v922_v13 = vmul.f32 0.0078125, %v919_v12 }
 0x368   : > { %v924_v14 = vadd.f32 1e-06, %v922_v13 }
 0x36a   : > { %3629 = vrsqrt.f32 %v924_v14 }
 0x370   : > { %v3628_v15 = vpop.eup %3627 }
 0x371   : > { %v927_v16 = vmul.f32 %v3628_v15, %v4531_v43 }
 0x373   : > { %v935_v20 = vmul.f32 %v3046_v18, %v927_v16 }
 0x374   : > { %v3630_v17 = vpop.eup %3629 }
 0x375   : > { %v928_v19 = vmul.f32 %v3630_v17, %v4533_v44 }
 0x377   : > { %v936_v21 = vmul.f32 %v3046_v18, %v928_v19 }
 0x379   : > { %v937_v22 = vpack.c.bf16 %v936_v21, %v935_v20 }
 0x37b   : > { %1131 = vmatmul.mubr.bf16.vlgmr.msra.gmra.mrb[0].mxu0 %v937_v22  ;;  %3333 = vmatmul.mubr.bf16.vlgmr.msra.gmra.mrb[0].mxu1 %v937_v22 }
 0x37c   : > { %3338 = vmatprep.mubr.msk.bf16.mxu0 %vm4056_vm4, %v4054_v47  ;;  %3344 = vmatprep.mubr.msk.bf16.mxu1 %vm4056_vm4, %v4054_v47 }
 0x44e   : > { %v4590_v24 = vpop.f32.mrb[0].mxu0  ;;  %v1175_v25 = vpop.f32.mrb[0].mxu1 }
 0x44f   : > { %v4595_v27 = vpop.f32.mrb[1].mxu0  ;;  %v3334_v28 = vpop.f32.mrb[1].mxu1  ;;  %v1183_v29 = vsub.f32 0.0, %v4590_v24  ;;  %v4599_v30 = vmul.f32 %v4590_v24, %v909_v23 }
 0x450   : > { %v1178_v31 = vpop.f32.mrb[2].mxu1  ;;  %1410 = vrot.lane.b32.xlu0 %v4595_v27, %s4057_s22  ;;  %v4603_v32 = vpop.f32.mrb[2].mxu0  ;;  %v4606_v33 = vmul.f32 %v4595_v27, %v909_v23  ;;  %v1211_v39 = vsub.f32 0.0, %v4595_v27 }
 0x451   : > { %v4608_v34 = vpack.c.bf16 %v1178_v31, %v1175_v25  ;;  %v3335_v35 = vpop.f32.mrb[3].mxu1  ;;  %1367 = vrot.lane.b32.xlu1 %v1183_v29, %s4058_s23  ;;  %v1138_v36 = vpop.f32.mrb[3].mxu0  ;;  %v4612_v37 = vmul.f32 %v4603_v32, %v910_v26  ;;  %v1184_v40 = vsub.f32 0.0, %v4603_v32 }
 0x452   : > { %v4614_v38 = vmul.f32 %v1138_v36, %v910_v26  ;;  %v1212_v41 = vsub.f32 0.0, %v1138_v36 }
 0x453   : > { %3343 = vmatpush3.bf16.msra.mxu1 %v4608_v34 }
 0x454   : > { %1385 = vrot.lane.b32.xlu0 %v910_v26, %s4059_s27  ;;  %3354 = vmatprep.subr.bf16.mxu1 %v4054_v47 }
 0x455   : > { %1404 = vrot.lane.b32.xlu1 %v1211_v39, %s4058_s23 }
 0x459   : > { %1412 = vrot.lane.b32.xlu1 %v1138_v36, %s4057_s22 }
 0x45d   : > { %1369 = vrot.lane.b32.xlu1 %v1184_v40, %s4058_s23 }
 0x461   : > { %1406 = vrot.lane.b32.xlu1 %v1212_v41, %s4058_s23 }
 0x465   : > { %1373 = vrot.lane.b32.xlu1 %v4590_v24, %s4057_s22 }
 0x469   : > { %1375 = vrot.lane.b32.xlu1 %v4603_v32, %s4057_s22 }
 0x46d   : > { %1383 = vrot.lane.b32.xlu1 %v909_v23, %s4059_s27 }
 0x4c2   : > { %v1411_v46 = vpop.permute.xlu0 %1410 }
 0x4c3   : > { %v1368_v42 = vpop.permute.xlu1 %1367 }
 0x4c6   : > { %v1386_v0 = vpop.permute.xlu0 %1385 }
 0x4c7   : > { %v1405_v48 = vpop.permute.xlu1 %1404  ;;  %v1419_v2 = vmul.f32 %v1386_v0, %v1138_v36  ;;  %v1390_v10 = vmul.f32 %v1386_v0, %v4603_v32 }
 0x4c8   : > { %v1416_v49 = vsel %vm1201_vm5, %v1405_v48, %v1411_v46 }
 0x4c9   : > { %v1420_v50 = vmul.f32 %v1416_v49, %v4630_v45 }
 0x4cb   : > { %v1413_v51 = vpop.permute.xlu1 %1412  ;;  %1424 = vrot.lane.b32.xlu1 %v1420_v50, %s4059_s27 }
 0x4cf   : > { %v1370_v52 = vpop.permute.xlu1 %1369 }
 0x4d3   : > { %v1407_v54 = vpop.permute.xlu1 %1406 }
 0x4d4   : > { %v1417_v55 = vsel %vm1201_vm5, %v1407_v54, %v1413_v51  ;;  %v908_v51 = vld [vmem:[#allocation3 + $0x8] sm:$0xff] }
 0x4d5   : > { %v1421_v56 = vmul.f32 %v1417_v55, %v912_v53 }
 0x4d7   : > { %1426 = vrot.lane.b32.xlu0 %v1421_v56, %s4059_s27  ;;  %v1374_v57 = vpop.permute.xlu1 %1373 }
 0x4d8   : > { %v1379_v58 = vsel %vm1201_vm5, %v1368_v42, %v1374_v57 }
 0x4d9   : > { %v1391_v59 = vmul.f32 %v1379_v58, %v4630_v45 }
 0x4db   : > { %1395 = vrot.lane.b32.xlu1 %v1391_v59, %s4059_s27  ;;  %v1376_v60 = vpop.permute.xlu1 %1375 }
 0x4dc   : > { %v1380_v61 = vsel %vm1201_vm5, %v1370_v52, %v1376_v60 }
 0x4dd   : > { %v1392_v62 = vmul.f32 %v1380_v61, %v912_v53 }
 0x4df   : > { %1215 = vrot.lane.b32.xlu1 %v1211_v39, %s4057_s22  ;;  %1397 = vrot.lane.b32.xlu0 %v1392_v62, %s4059_s27  ;;  %v1384_v63 = vpop.permute.xlu1 %1383 }
 0x4e0   : > { %v1418_v3 = vmul.f32 %v1384_v63, %v4595_v27  ;;  %v1389_v11 = vmul.f32 %v1384_v63, %v4590_v24 }
 0x4e3   : > { %1223 = vrot.lane.b32.xlu1 %v4595_v27, %s4058_s23  ;;  %1217 = vrot.lane.b32.xlu0 %v1212_v41, %s4057_s22 }
 0x4e7   : > { %1187 = vrot.lane.b32.xlu1 %v1183_v29, %s4057_s22  ;;  %1225 = vrot.lane.b32.xlu0 %v1138_v36, %s4058_s23 }
 0x4eb   : > { %1195 = vrot.lane.b32.xlu1 %v4590_v24, %s4058_s23  ;;  %1189 = vrot.lane.b32.xlu0 %v1184_v40, %s4057_s22 }
 0x4ef   : > { %1197 = vrot.lane.b32.xlu0 %v4603_v32, %s4058_s23 }
 0x53d   : > { %v1425_v1 = vpop.permute.xlu1 %1424 }
 0x53e   : > { %v1430_v6 = vadd.f32 %v1425_v1, %v1418_v3 }
 0x549   : > { %v1427_v4 = vpop.permute.xlu0 %1426 }
 0x54a   : > { %v1431_v7 = vadd.f32 %v1427_v4, %v1419_v2 }
 0x54c   : > { %v1432_v8 = vpack.c.bf16 %v1431_v7, %v1430_v6 }
 0x54d   : > { %v1396_v9 = vpop.permute.xlu1 %1395 }
 0x54e   : > { %1437 = vrot.lane.b32.xlu1 %v1432_v8, %s4059_s27  ;;  %v1401_v14 = vadd.f32 %v1396_v9, %v1389_v11 }
 0x551   : > { %v1398_v12 = vpop.permute.xlu0 %1397  ;;  %v1216_v13 = vpop.permute.xlu1 %1215 }
 0x552   : > { %v1402_v15 = vadd.f32 %v1398_v12, %v1390_v10 }
 0x554   : > { %v1403_v16 = vpack.c.bf16 %v1402_v15, %v1401_v14 }
 0x555   : > { %v1218_v17 = vpop.permute.xlu0 %1217  ;;  %v1224_v18 = vpop.permute.xlu1 %1223 }
 0x556   : > { %v1229_v19 = vsel %vm1201_vm5, %v1216_v13, %v1224_v18  ;;  %1434 = vrot.lane.b32.xlu0 %v1403_v16, %s4059_s27 }
 0x557   : > { %v1233_v20 = vmul.f32 %v1229_v19, %v4630_v45 }
 0x559   : > { %v1226_v21 = vpop.permute.xlu0 %1225  ;;  %v1188_v22 = vpop.permute.xlu1 %1187  ;;  %v1235_v24 = vadd.f32 %v1233_v20, %v4606_v33 }
 0x55a   : > { %v1230_v23 = vsel %vm1201_vm5, %v1218_v17, %v1226_v21 }
 0x55b   : > { %v1234_v25 = vmul.f32 %v1230_v23, %v912_v53 }
 0x55d   : > { %v1236_v26 = vadd.f32 %v1234_v25, %v4614_v38  ;;  %v1190_v27 = vpop.permute.xlu0 %1189  ;;  %v1196_v28 = vpop.permute.xlu1 %1195 }
 0x55e   : > { %v1202_v29 = vsel %vm1201_vm5, %v1188_v22, %v1196_v28 }
 0x55f   : > { %v1237_v31 = vpack.c.bf16 %v1236_v26, %v1235_v24  ;;  %v1206_v32 = vmul.f32 %v1202_v29, %v4630_v45 }
 0x561   : > { %v1198_v35 = vpop.permute.xlu0 %1197  ;;  %v1243_v36 = vsel %vm1238_vm6, %v1237_v31, 0  ;;  %v1208_v33 = vadd.f32 %v1206_v32, %v4599_v30 }
 0x562   : > { %v1203_v39 = vsel %vm1201_vm5, %v1190_v27, %v1198_v35  ;;  %3337 = vmatpush3.bf16.xpose.msra.mxu0 %v1243_v36 }
 0x563   : > { %v1207_v40 = vmul.f32 %v1203_v39, %v912_v53  ;;  %3348 = vmatprep.subr.bf16.mxu0 %v4054_v47  ;;  %v3591_v39 = vld [vmem:[%s4492_s14 + $0x20] sm:$0xff]  }
 0x565   : > { %v1209_v38 = vadd.f32 %v1207_v40, %v4612_v37  ;;  %v907_v37 = vld [vmem:[#allocation3] sm:$0xff] }
 0x567   : > { %v1210_v41 = vpack.c.bf16 %v1209_v38, %v1208_v33  ;;  %v3592_v33 = vld [vmem:[%s4492_s14 + $0x28] sm:$0xff]  }
 0x569   : > { %3339 = vmatmul.mubr.msk.bf16.vlgmr.msra.gmra.mrb[4].mxu0 %vm1238_vm6, %v1210_v41 }
 0x56a   : > { %3350 = vmatprep.mubr.msk.bf16.mxu0 %vm4056_vm4, %v4054_v47 }
 0x5c0   : > { %v1438_v42 = vpop.permute.xlu1 %1437 }
 0x5c1   : > { %v1443_v45 = vsel %vm1238_vm6, %v1438_v42, 0 }
 0x5c2   : > { %3349 = vmatpush3.bf16.xpose.msra.mxu0 %v1443_v45  ;;  %v3587_v45 = vld [vmem:[%s4492_s14] sm:$0xff]  }
 0x5c3   : > { %3360 = vmatprep.subr.bf16.mxu0 %v4054_v47 }
 0x5c8   : > { %v1435_v46 = vpop.permute.xlu0 %1434 }
 0x5c9   : > { %3351 = vmatmul.mubr.msk.bf16.vlgmr.msra.gmra.mrb[8].mxu0 %vm1238_vm6, %v1435_v46 }
 0x5ca   : > { %3368 = vmatprep.mubr.msk.bf16.mxu0 %vm4056_vm4, %v4054_v47  ;;  %3361 = vmatpush3.bf16.msra.mxu0 %v3591_v39  ;;  %v1757_v39 = vld [vmem:[%s4494_s17 + $0xc8] sm:$0xff] }
 0x5cb   : > { %3362 = vmatprep.subr.bf16.mxu0 %v4054_v47 }
 0x5ce   : > { %3363 = vmatpush3.bf16.msra.mxu0 %v3592_v33  ;;  %v1761_v33 = vld [vmem:[%s4494_s17 + $0xe8] sm:$0xff] }
 0x5cf   : > { %3364 = vmatprep.subr.bf16.mxu0 %v4054_v47 }
 0x63c   : > { %v1279_v30 = vpop.f32.mrb[4].mxu0 }
 0x63d   : > { %v1286_v48 = vmul.f32 0.125, %v1279_v30  ;;  %v3340_v49 = vpop.f32.mrb[5].mxu0  ;;  %v3593_v30 = vld [vmem:[%s4492_s14 + $0x30] sm:$0xff]  }
 0x63e   : > { %v1282_v50 = vpop.f32.mrb[6].mxu0  ;;  %3365 = vmatpush3.bf16.msra.mxu0 %v3593_v30  ;;  %v3590_v49 = vld [vmem:[%s4492_s14 + $0x18] sm:$0xff]   ;;  %v1765_v30 = vld [vmem:[%s4494_s17 + $0x108] sm:$0xff] }
 0x63f   : > { %v1287_v52 = vmul.f32 0.125, %v1282_v50  ;;  %v3341_v53 = vpop.f32.mrb[7].mxu0  ;;  %v1288_v54 = vadd.f32 %v1286_v48, %v907_v37  ;;  %3366 = vmatprep.subr.bf16.mxu0 %v4054_v47  ;;  %v3589_v48 = vld [vmem:[%s4492_s14 + $0x10] sm:$0xff]   ;;  %v3594_v50 = vld [vmem:[%s4492_s14 + $0x38] sm:$0xff]  }
 0x641   : > { %v1291_v55 = vsel %vm1290_vm7, %v1288_v54, -inf  ;;  %v1289_v56 = vadd.f32 %v1287_v52, %v908_v51 }
 0x642   : > { %1292 = vmax.xlane.f32.xlu1 %v1291_v55  ;;  %3367 = vmatpush3.bf16.msra.mxu0 %v3594_v50 }
 0x643   : > { %v1294_v57 = vsel %vm1290_vm7, %v1289_v56, -inf }
 0x644   : > { %1295 = vmax.xlane.f32.xlu0 %v1294_v57 }
 0x69c   : > { %v1479_v58 = vpop.f32.mrb[8].mxu0 }
 0x69d   : > { %v1486_v59 = vmul.f32 0.125, %v1479_v58  ;;  %v3352_v60 = vpop.f32.mrb[9].mxu0 }
 0x69e   : > { %v1482_v61 = vpop.f32.mrb[10].mxu0  ;;  %v1732_v60 = vld [vmem:[%s4494_s17] sm:$0xff] }
 0x69f   : > { %v1487_v62 = vmul.f32 0.125, %v1482_v61  ;;  %v3353_v63 = vpop.f32.mrb[11].mxu0  ;;  %v1488_v0 = vadd.f32 %v1486_v59, %v907_v37  ;;  %v3588_v37 = vld [vmem:[%s4492_s14 + $0x8] sm:$0xff]   ;;  %v1736_v61 = vld [vmem:[%s4494_s17 + $0x20] sm:$0xff] }
 0x6a0   : > { %v3086_v63 = vcombine.low %v1732_v60, %v1736_v61 }
 0x6a1   : > { %v1490_v1 = vsel %vm1290_vm7, %v1488_v0, -inf  ;;  %v1489_v2 = vadd.f32 %v1487_v62, %v908_v51  ;;  %v1733_v62 = vld [vmem:[%s4494_s17 + $0x8] sm:$0xff] }
 0x6a2   : > { %1491 = vmax.xlane.f32.xlu0 %v1490_v1  ;;  %v1737_v1 = vld [vmem:[%s4494_s17 + $0x28] sm:$0xff] }
 0x6a3   : > { %v1493_v3 = vsel %vm1290_vm7, %v1489_v2, -inf }
 0x6a4   : > { %1494 = vmax.xlane.f32.xlu1 %v1493_v3  ;;  %v1744_v3 = vld [vmem:[%s4494_s17 + $0x60] sm:$0xff] }
 0x6cf   : > { %v1293_v4 = vpop.xlane.xlu1 %1292 }
 0x6d0   : > { %v1297_v6 = vsub.f32 %v1288_v54, %v1293_v4  ;;  %v3088_v4 = vcombine.low %v1733_v62, %v1737_v1 }
 0x6d1   : > { %v1296_v7 = vpop.xlane.xlu0 %1295 }
 0x6d2   : > { %v1299_v8 = vmul.f32 1.442695, %v1297_v6  ;;  %v1298_v9 = vsub.f32 %v1289_v56, %v1296_v7  ;;  %v3089_v6 = vcombine.high %v1733_v62, %v1737_v1  ;;  %v1781_v62 = vld [vmem:[%s4494_s17 + $0x188] sm:$0xff] }
 0x6d4   : > { %3631 = vpow2.f32 %v1299_v8  ;;  %v1301_v10 = vmul.f32 1.442695, %v1298_v9  ;;  %v1741_v8 = vld [vmem:[%s4494_s17 + $0x48] sm:$0xff] }
 0x6d5   : > { %v1745_v9 = vld [vmem:[%s4494_s17 + $0x68] sm:$0xff] }
 0x6d6   : > { %3633 = vpow2.f32 %v1301_v10  ;;  %v3097_v10 = vcombine.high %v1741_v8, %v1745_v9 }
 0x6de   : > { %v3632_v11 = vpop.eup %3631 }
 0x6df   : > { %v1303_v12 = vsel %vm1290_vm7, %v3632_v11, 0.0 }
 0x6e0   : > { %v3634_v13 = vpop.eup %3633  ;;  %1304 = vadd.xlane.f32.xlu0 %v1303_v12  ;;  %v3096_v12 = vcombine.low %v1741_v8, %v1745_v9  ;;  %v1735_v8 = vld [vmem:[%s4494_s17 + $0x18] sm:$0xff] }
 0x6e1   : > { %v1306_v14 = vsel %vm1290_vm7, %v3634_v13, 0.0 }
 0x6e2   : > { %1307 = vadd.xlane.f32.xlu1 %v1306_v14 }
 0x72f   : > { %v1492_v15 = vpop.xlane.xlu0 %1491 }
 0x730   : > { %v1496_v16 = vsub.f32 %v1488_v0, %v1492_v15  ;;  %v3087_v0 = vcombine.high %v1732_v60, %v1736_v61 }
 0x731   : > { %v1495_v17 = vpop.xlane.xlu1 %1494 }
 0x732   : > { %v1498_v18 = vmul.f32 1.442695, %v1496_v16  ;;  %v1497_v19 = vsub.f32 %v1489_v2, %v1495_v17  ;;  %v1740_v2 = vld [vmem:[%s4494_s17 + $0x40] sm:$0xff]  ;;  %2116 = vmatprep.subr.bf16.mxu0 %v3087_v0 }
 0x733   : > { %v3095_v7 = vcombine.high %v1740_v2, %v1744_v3  ;;  %v1788_v0 = vld [vmem:[%s4494_s17 + $0x1c0] sm:$0xff] }
 0x734   : > { %3635 = vpow2.f32 %v1498_v18  ;;  %v1500_v20 = vmul.f32 1.442695, %v1497_v19 }
 0x736   : > { %3637 = vpow2.f32 %v1500_v20 }
 0x73e   : > { %v3636_v21 = vpop.eup %3635 }
 0x73f   : > { %v1502_v22 = vsel %vm1290_vm7, %v3636_v21, 0.0 }
 0x740   : > { %v3638_v23 = vpop.eup %3637  ;;  %1503 = vadd.xlane.f32.xlu0 %v1502_v22 }
 0x741   : > { %v1505_v25 = vsel %vm1290_vm7, %v3638_v23, 0.0 }
 0x742   : > { %1506 = vadd.xlane.f32.xlu1 %v1505_v25 }
 0x756   : > { %1514 = vrot.lane.b32.xlu0 %v4608_v34, %s4059_s27 }
 0x76d   : > { %v1305_v24 = vpop.xlane.xlu0 %1304 }
 0x76e   : > { %3639 = vrcp.f32 %v1305_v24 }
 0x76f   : > { %v1308_v26 = vpop.xlane.xlu1 %1307 }
 0x770   : > { %3641 = vrcp.f32 %v1308_v26 }
 0x778   : > { %v3640_v27 = vpop.eup %3639 }
 0x779   : > { %v1310_v29 = vmul.f32 %v3640_v27, %v3632_v11  ;;  %v3094_v11 = vcombine.low %v1740_v2, %v1744_v3  ;;  %v1748_v27 = vld [vmem:[%s4494_s17 + $0x80] sm:$0xff]  ;;  %v1789_v3 = vld [vmem:[%s4494_s17 + $0x1c8] sm:$0xff] }
 0x77a   : > { %v3642_v28 = vpop.eup %3641  ;;  %v1792_v2 = vld [vmem:[%s4494_s17 + $0x1e0] sm:$0xff] }
 0x77b   : > { %v1312_v31 = vmul.f32 %v3642_v28, %v3634_v13  ;;  %v1749_v28 = vld [vmem:[%s4494_s17 + $0x88] sm:$0xff] }
 0x77d   : > { %v1313_v32 = vpack.c.bf16 %v1312_v31, %v1310_v29  ;;  %v1753_v31 = vld [vmem:[%s4494_s17 + $0xa8] sm:$0xff] }
 0x77f   : > { %3345 = vmatmul.mubr.msk.bf16.vlgmr.msra.gmra.mrb[4].mxu1 %vm1290_vm7, %v1313_v32 }
 0x780   : > { %3356 = vmatprep.mubr.msk.bf16.mxu1 %vm4056_vm4, %v4054_v47 }
 0x7cd   : > { %v1504_v35 = vpop.xlane.xlu0 %1503 }
 0x7ce   : > { %3643 = vrcp.f32 %v1504_v35  ;;  %v3105_v35 = vcombine.high %v1749_v28, %v1753_v31 }
 0x7cf   : > { %v1507_v34 = vpop.xlane.xlu1 %1506 }
 0x7d0   : > { %3645 = vrcp.f32 %v1507_v34  ;;  %v1756_v34 = vld [vmem:[%s4494_s17 + $0xc0] sm:$0xff] }
 0x7d1   : > { %v1515_v36 = vpop.permute.xlu0 %1514 }
 0x7d2   : > { %3355 = vmatpush3.bf16.msra.mxu1 %v1515_v36  ;;  %v1760_v36 = vld [vmem:[%s4494_s17 + $0xe0] sm:$0xff] }
 0x7d3   : > { %3372 = vmatprep.subr.bf16.mxu1 %v4054_v47 }
 0x7d8   : > { %v3644_v40 = vpop.eup %3643 }
 0x7d9   : > { %v1509_v41 = vmul.f32 %v3644_v40, %v3636_v21  ;;  %v3111_v40 = vcombine.high %v1756_v34, %v1760_v36 }
 0x7da   : > { %v3646_v38 = vpop.eup %3645 }
 0x7db   : > { %v1511_v42 = vmul.f32 %v3646_v38, %v3638_v23  ;;  %v3110_v38 = vcombine.low %v1756_v34, %v1760_v36  ;;  %v1743_v34 = vld [vmem:[%s4494_s17 + $0x58] sm:$0xff] }
 0x7dc   : > { %v1747_v36 = vld [vmem:[%s4494_s17 + $0x78] sm:$0xff] }
 0x7dd   : > { %v1512_v46 = vpack.c.bf16 %v1511_v42, %v1509_v41  ;;  %v3112_v41 = vcombine.low %v1757_v39, %v1761_v33  ;;  %v3113_v42 = vcombine.high %v1757_v39, %v1761_v33 }
 0x7df   : > { %3357 = vmatmul.mubr.msk.bf16.vlgmr.msra.gmra.mrb[8].mxu1 %vm1290_vm7, %v1512_v46  ;;  %v1768_v46 = vld [vmem:[%s4494_s17 + $0x120] sm:$0xff] }
 0x7e0   : > { %3373 = vmatpush3.bf16.msra.mxu1 %v3587_v45  ;;  %3380 = vmatprep.mubr.msk.bf16.mxu1 %vm4056_vm4, %v4054_v47  ;;  %v1764_v45 = vld [vmem:[%s4494_s17 + $0x100] sm:$0xff] }
 0x7e1   : > { %3374 = vmatprep.subr.bf16.mxu1 %v4054_v47 }
 0x7e4   : > { %3375 = vmatpush3.bf16.msra.mxu1 %v3588_v37  ;;  %v3119_v37 = vcombine.high %v1764_v45, %v1768_v46 }
 0x7e5   : > { %3376 = vmatprep.subr.bf16.mxu1 %v4054_v47 }
 0x7e8   : > { %3377 = vmatpush3.bf16.msra.mxu1 %v3589_v48  ;;  %v1769_v48 = vld [vmem:[%s4494_s17 + $0x128] sm:$0xff] }
 0x7e9   : > { %3378 = vmatprep.subr.bf16.mxu1 %v4054_v47  ;;  %v3120_v50 = vcombine.low %v1765_v30, %v1769_v48 }
 0x7ec   : > { %3379 = vmatpush3.bf16.msra.mxu1 %v3590_v49  ;;  %v3118_v49 = vcombine.low %v1764_v45, %v1768_v46  ;;  %v1754_v45 = vld [vmem:[%s4494_s17 + $0xb0] sm:$0xff]  ;;  %v1751_v46 = vld [vmem:[%s4494_s17 + $0x98] sm:$0xff] }
 0x7ed   : > { %2159 = vmatprep.subr.bf16.mxu1 %v3089_v6  ;;  %v1734_v6 = vld [vmem:[%s4494_s17 + $0x10] sm:$0xff] }
 0x852   : > { %v1351_v51 = vpop.f32.mrb[4].mxu1 }
 0x853   : > { %v3346_v52 = vpop.f32.mrb[5].mxu1 }
 0x854   : > { %v1354_v53 = vpop.f32.mrb[6].mxu1  ;;  %v1772_v52 = vld [vmem:[%s4494_s17 + $0x140] sm:$0xff] }
 0x855   : > { %v1358_v54 = vpack.c.bf16 %v1354_v53, %v1351_v51  ;;  %v3347_v55 = vpop.f32.mrb[7].mxu1  ;;  %v3121_v51 = vcombine.high %v1765_v30, %v1769_v48  ;;  %v1776_v53 = vld [vmem:[%s4494_s17 + $0x160] sm:$0xff]  ;;  %v1755_v30 = vld [vmem:[%s4494_s17 + $0xb8] sm:$0xff]  ;;  %v3100_v48 = vcombine.low %v1743_v34, %v1747_v36 }
 0x856   : > { %v3126_v55 = vcombine.low %v1772_v52, %v1776_v53 }
 0x857   : > { %3381 = vmatmul.mubr.msk.bf16.vlgmr.msra.gmra.mrb[12].mxu1 %vm1238_vm6, %v1358_v54  ;;  %v1773_v54 = vld [vmem:[%s4494_s17 + $0x148] sm:$0xff] }
 0x858   : > { %2191 = vmatprep.mubr.bf16.mxu1 %v4055_v5  ;;  %2160 = vmatpush1.bf16.msra.mxu1 %v3088_v4  ;;  %v1793_v4 = vld [vmem:[%s4494_s17 + $0x1e8] sm:$0xff] }
 0x859   : > { %2161 = vmatprep.subr.bf16.mxu1 %v3097_v10 }
 0x85c   : > { %2162 = vmatpush1.bf16.msra.mxu1 %v3096_v12 }
 0x85d   : > { %2163 = vmatprep.subr.bf16.mxu1 %v3105_v35  ;;  %v1746_v35 = vld [vmem:[%s4494_s17 + $0x70] sm:$0xff] }
 0x8b2   : > { %v1554_v56 = vpop.f32.mrb[8].mxu1 }
 0x8b3   : > { %v3358_v47 = vpop.f32.mrb[9].mxu1 }
 0x8b4   : > { %v1557_v57 = vpop.f32.mrb[10].mxu1  ;;  %v1777_v47 = vld [vmem:[%s4494_s17 + $0x168] sm:$0xff] }
 0x8b5   : > { %v1561_v58 = vpack.c.bf16 %v1557_v57, %v1554_v56  ;;  %v3359_v59 = vpop.f32.mrb[11].mxu1  ;;  %v3127_v56 = vcombine.high %v1772_v52, %v1776_v53  ;;  %v1780_v57 = vld [vmem:[%s4494_s17 + $0x180] sm:$0xff]  ;;  %v3129_v60 = vcombine.high %v1773_v54, %v1777_v47  ;;  %v1762_v52 = vld [vmem:[%s4494_s17 + $0xf0] sm:$0xff]  ;;  %v1759_v53 = vld [vmem:[%s4494_s17 + $0xd8] sm:$0xff] }
 0x8b6   : > { %v3128_v59 = vcombine.low %v1773_v54, %v1777_v47  ;;  %v1763_v54 = vld [vmem:[%s4494_s17 + $0xf8] sm:$0xff] }
 0x8b7   : > { %3369 = vmatmul.mubr.msk.bf16.vlgmr.msra.gmra.mrb[12].mxu0 %vm1238_vm6, %v1561_v58  ;;  %v1784_v58 = vld [vmem:[%s4494_s17 + $0x1a0] sm:$0xff] }
 0x8b8   : > { %2148 = vmatprep.mubr.bf16.mxu0 %v4055_v5  ;;  %2117 = vmatpush1.bf16.msra.mxu0 %v3086_v63  ;;  %v3135_v61 = vcombine.high %v1780_v57, %v1784_v58  ;;  %v1785_v63 = vld [vmem:[%s4494_s17 + $0x1a8] sm:$0xff]  ;;  %v3134_v9 = vcombine.low %v1780_v57, %v1784_v58  ;;  %v3117_v57 = vcombine.high %v1759_v53, %v1763_v54  ;;  %v1766_v58 = vld [vmem:[%s4494_s17 + $0x110] sm:$0xff] }
 0x8b9   : > { %2118 = vmatprep.subr.bf16.mxu0 %v3095_v7  ;;  %v3137_v1 = vcombine.high %v1781_v62, %v1785_v63  ;;  %v1738_v7 = vld [vmem:[%s4494_s17 + $0x30] sm:$0xff]  ;;  %v3136_v12 = vcombine.low %v1781_v62, %v1785_v63 }
 0x8ba   : > { %v3090_v10 = vcombine.low %v1734_v6, %v1738_v7 }
 0x8bc   : > { %2119 = vmatpush1.bf16.msra.mxu0 %v3094_v11  ;;  %v1739_v11 = vld [vmem:[%s4494_s17 + $0x38] sm:$0xff] }
 0x92a   : > { %v1699_v13 = vpop.f32.mrb[12].mxu1 }
 0x92b   : > { %v3382_v14 = vpop.f32.mrb[13].mxu1 }
 0x92c   : > { %v1702_v15 = vpop.f32.mrb[14].mxu1  ;;  %v3092_v14 = vcombine.low %v1735_v8, %v1739_v11 }
 0x92d   : > { %v3383_v16 = vpop.f32.mrb[15].mxu1 }
 0x92e   : > { %v3142_v16 = vcombine.low %v1788_v0, %v1792_v2 }
 0x98a   : > { %v1631_v17 = vpop.f32.mrb[12].mxu0 }
 0x98b   : > { %v1700_v18 = vadd.f32 %v1699_v13, %v1631_v17  ;;  %v3370_v19 = vpop.f32.mrb[13].mxu0  ;;  %v3143_v13 = vcombine.high %v1788_v0, %v1792_v2  ;;  %v3144_v17 = vcombine.low %v1789_v3, %v1793_v4  ;;  %v1778_v2 = vld [vmem:[%s4494_s17 + $0x170] sm:$0xff] }
 0x98c   : > { %v1634_v20 = vpop.f32.mrb[14].mxu0  ;;  %v3093_v19 = vcombine.high %v1735_v8, %v1739_v11  ;;  %v1786_v11 = vld [vmem:[%s4494_s17 + $0x1b0] sm:$0xff] }
 0x98d   : > { %v4722_v21 = vadd.f32 %v1700_v18, %v4531_v43  ;;  %v1703_v22 = vadd.f32 %v1702_v15, %v1634_v20  ;;  %v3371_v23 = vpop.f32.mrb[15].mxu0  ;;  %v1752_v43 = vld [vmem:[%s4494_s17 + $0xa0] sm:$0xff]  ;;  %v3145_v15 = vcombine.high %v1789_v3, %v1793_v4  ;;  %v3091_v18 = vcombine.high %v1734_v6, %v1738_v7  ;;  %v1775_v3 = vld [vmem:[%s4494_s17 + $0x158] sm:$0xff] }
 0x98e   : > { %v3103_v29 = vcombine.high %v1748_v27, %v1752_v43  ;;  %v3102_v32 = vcombine.low %v1748_v27, %v1752_v43  ;;  %v1779_v4 = vld [vmem:[%s4494_s17 + $0x178] sm:$0xff] }
 0x98f   : > { %v4725_v25 = vadd.f32 %v1703_v22, %v4533_v44  ;;  %v1709_v24 = vmul.f32 %v4722_v21, %v4722_v21  ;;  %v3104_v44 = vcombine.low %v1749_v28, %v1753_v31  ;;  %v3085_v31 = vld [vmem:[%s738_s29] ss:$0 sm:$0xff]  ;;  %s4966_s29 = sld [smem:[#allocation37_spill]] (!%p3190_p5) }
 0x990   : > { %2120 = vmatprep.subr.bf16.mxu0 %v3103_v29 }
 0x991   : > { %1711 = vadd.xlane.f32.xlu1 %v1709_v24  ;;  %v1710_v26 = vmul.f32 %v4725_v25, %v4725_v25  ;;  %2121 = vmatpush1.bf16.msra.mxu0 %v3102_v32 }
 0x992   : > { %2164 = vmatpush1.bf16.msra.mxu1 %v3104_v44  ;;  %2122 = vmatprep.subr.bf16.mxu0 %v3111_v40  ;;  %v1742_v44 = vld [vmem:[%s4494_s17 + $0x50] sm:$0xff] }
 0x993   : > { %2165 = vmatprep.subr.bf16.mxu1 %v3113_v42  ;;  %v1750_v42 = vld [vmem:[%s4494_s17 + $0x90] sm:$0xff] }
 0x995   : > { %1713 = vadd.xlane.f32.xlu1 %v1710_v26  ;;  %2123 = vmatpush1.bf16.msra.mxu0 %v3110_v38  ;;  %v3099_v38 = vcombine.high %v1742_v44, %v1746_v35 }
 0x996   : > { %2166 = vmatpush1.bf16.msra.mxu1 %v3112_v41  ;;  %2124 = vmatprep.subr.bf16.mxu0 %v3119_v37  ;;  %v3101_v41 = vcombine.high %v1743_v34, %v1747_v36  ;;  %v3098_v37 = vcombine.low %v1742_v44, %v1746_v35  ;;  %v3598_v44 = vld [vmem:[%s4512_s19 + $0x80] sm:$0xff]   ;;  %v3599_v35 = vld [vmem:[%s4512_s19 + $0x48] sm:$0xff]  }
 0x997   : > { %2167 = vmatprep.subr.bf16.mxu1 %v3121_v51  ;;  %v1758_v51 = vld [vmem:[%s4494_s17 + $0xd0] sm:$0xff]  ;;  %v3600_v34 = vld [vmem:[%s4512_s19 + $0xc8] sm:$0xff]  }
 0x998   : > { %v3115_v47 = vcombine.high %v1758_v51, %v1762_v52  ;;  %v3114_v62 = vcombine.low %v1758_v51, %v1762_v52  ;;  %v3601_v36 = vld [vmem:[%s4512_s19 + $0x8] sm:$0xff]  }
 0x999   : > { %2125 = vmatpush1.bf16.msra.mxu0 %v3118_v49  ;;  %v3107_v49 = vcombine.high %v1750_v42, %v1754_v45  ;;  %v3615_v51 = vld [vmem:[%s4512_s19 + $0x68] sm:$0xff]  }
 0x99a   : > { %2168 = vmatpush1.bf16.msra.mxu1 %v3120_v50  ;;  %2126 = vmatprep.subr.bf16.mxu0 %v3127_v56  ;;  %v3109_v50 = vcombine.high %v1751_v46, %v1755_v30  ;;  %v3108_v56 = vcombine.low %v1751_v46, %v1755_v30  ;;  %v3609_v46 = vld [vmem:[%s4512_s19 + $0x18] sm:$0xff]   ;;  %v3616_v52 = vld [vmem:[%s4512_s19 + $0xe8] sm:$0xff]  }
 0x99b   : > { %2169 = vmatprep.subr.bf16.mxu1 %v3129_v60  ;;  %v1767_v60 = vld [vmem:[%s4494_s17 + $0x118] sm:$0xff] }
 0x99c   : > { %v3610_v30 = vld [vmem:[%s4512_s19 + $0x98] sm:$0xff]  }
 0x99d   : > { %2127 = vmatpush1.bf16.msra.mxu0 %v3126_v55  ;;  %v3106_v55 = vcombine.low %v1750_v42, %v1754_v45  ;;  %v3607_v42 = vld [vmem:[%s4512_s19 + $0x58] sm:$0xff]  }
 0x99e   : > { %2170 = vmatpush1.bf16.msra.mxu1 %v3128_v59  ;;  %2128 = vmatprep.subr.bf16.mxu0 %v3135_v61  ;;  %v1770_v59 = vld [vmem:[%s4494_s17 + $0x130] sm:$0xff]  ;;  %v1771_v61 = vld [vmem:[%s4494_s17 + $0x138] sm:$0xff] }
 0x99f   : > { %2171 = vmatprep.subr.bf16.mxu1 %v3137_v1  ;;  %v3123_v63 = vcombine.high %v1766_v58, %v1770_v59  ;;  %v3125_v0 = vcombine.high %v1767_v60, %v1771_v61  ;;  %v1774_v1 = vld [vmem:[%s4494_s17 + $0x150] sm:$0xff]  ;;  %v3122_v6 = vcombine.low %v1766_v58, %v1770_v59  ;;  %v3124_v7 = vcombine.low %v1767_v60, %v1771_v61  ;;  %v3608_v45 = vld [vmem:[%s4512_s19 + $0xd8] sm:$0xff]  }
 0x9a0   : > { %v3131_v8 = vcombine.high %v1774_v1, %v1778_v2  ;;  %v3623_v58 = vld [vmem:[%s4512_s19 + $0x78] sm:$0xff]  }
 0x9a1   : > { %2129 = vmatpush1.bf16.msra.mxu0 %v3134_v9  ;;  %v3133_v9 = vcombine.high %v1775_v3, %v1779_v4  ;;  %v3624_v59 = vld [vmem:[%s4512_s19 + $0xf8] sm:$0xff]  }
 0x9a2   : > { %2172 = vmatpush1.bf16.msra.mxu1 %v3136_v12  ;;  %2130 = vmatprep.subr.bf16.mxu0 %v3143_v13  ;;  %v1783_v12 = vld [vmem:[%s4494_s17 + $0x198] sm:$0xff] }
 0x9a3   : > { %2173 = vmatprep.subr.bf16.mxu1 %v3145_v15  ;;  %v1787_v13 = vld [vmem:[%s4494_s17 + $0x1b8] sm:$0xff]  ;;  %v3132_v15 = vcombine.low %v1775_v3, %v1779_v4 }
 0x9a4   : > { %v3625_v60 = vld [vmem:[%s4512_s19 + $0x38] sm:$0xff]  }
 0x9a5   : > { %2131 = vmatpush1.bf16.msra.mxu0 %v3142_v16  ;;  %v3626_v61 = vld [vmem:[%s4512_s19 + $0xb8] sm:$0xff]  }
 0x9a6   : > { %2174 = vmatpush1.bf16.msra.mxu1 %v3144_v17  ;;  %2202 = vmatprep.subr.bf16.mxu0 %v3091_v18  ;;  %v3141_v17 = vcombine.high %v1783_v12, %v1787_v13  ;;  %v1790_v18 = vld [vmem:[%s4494_s17 + $0x1d0] sm:$0xff] }
 0x9a7   : > { %2245 = vmatprep.subr.bf16.mxu1 %v3093_v19  ;;  %v1794_v19 = vld [vmem:[%s4494_s17 + $0x1f0] sm:$0xff] }
 0xa1e   : > { %v1712_v20 = vpop.xlane.xlu1 %1711 }
 0xa1f   : > { %v1715_v22 = vmul.f32 0.0078125, %v1712_v20  ;;  %v1791_v20 = vld [vmem:[%s4494_s17 + $0x1d8] sm:$0xff] }
 0xa21   : > { %v1717_v23 = vadd.f32 1e-06, %v1715_v22  ;;  %v1795_v22 = vld [vmem:[%s4494_s17 + $0x1f8] sm:$0xff] }
 0xa22   : > { %v1714_v24 = vpop.xlane.xlu1 %1713 }
 0xa23   : > { %3647 = vrsqrt.f32 %v1717_v23  ;;  %v1716_v26 = vmul.f32 0.0078125, %v1714_v24  ;;  %v3140_v24 = vcombine.low %v1783_v12, %v1787_v13 }
 0xa25   : > { %v1718_v27 = vadd.f32 1e-06, %v1716_v26  ;;  %v3147_v26 = vcombine.high %v1790_v18, %v1794_v19 }
 0xa27   : > { %3649 = vrsqrt.f32 %v1718_v27  ;;  %v3149_v27 = vcombine.high %v1791_v20, %v1795_v22 }
 0xa2d   : > { %v3648_v43 = vpop.eup %3647 }
 0xa2e   : > { %v1721_v28 = vmul.f32 %v3648_v43, %v4722_v21  ;;  %v3146_v43 = vcombine.low %v1790_v18, %v1794_v19 }
 0xa30   : > { %v1729_v39 = vmul.f32 %v3085_v31, %v1721_v28  ;;  %v3148_v28 = vcombine.low %v1791_v20, %v1795_v22 }
 0xa31   : > { %v3650_v29 = vpop.eup %3649 }
 0xa32   : > { %v1722_v32 = vmul.f32 %v3650_v29, %v4725_v25  ;;  %v3595_v29 = vld [vmem:[%s4512_s19 + $0x40] sm:$0xff]  }
 0xa34   : > { %v1730_v40 = vmul.f32 %v3085_v31, %v1722_v32  ;;  %v3596_v31 = vld [vmem:[%s4512_s19 + $0xc0] sm:$0xff]  }
 0xa35   : > { %v3597_v32 = vld [vmem:[%s4512_s19] sm:$0xff]  }
 0xa36   : > { %v4770_v33 = vpack.c.bf16 %v1730_v40, %v1729_v39  ;;  %v3602_v39 = vld [vmem:[%s4512_s19 + $0x88] sm:$0xff]   ;;  %v3603_v40 = vld [vmem:[%s4512_s19 + $0x50] sm:$0xff]  }
 0xa38   : > { %2149 = vmatmul.mubr.bf16.vlgmr.msra.gmra.mrb[16].mxu0 %v4770_v33  ;;  %2192 = vmatmul.mubr.bf16.vlgmr.msra.gmra.mrb[16].mxu1 %v4770_v33 }
 0xa39   : > { %2203 = vmatpush1.bf16.msra.mxu0 %v3090_v10  ;;  %2246 = vmatpush1.bf16.msra.mxu1 %v3092_v14  ;;  %v1782_v10 = vld [vmem:[%s4494_s17 + $0x190] sm:$0xff]  ;;  %v3130_v14 = vcombine.low %v1774_v1, %v1778_v2 }
 0xa3a   : > { %2204 = vmatprep.subr.bf16.mxu0 %v3099_v38  ;;  %2247 = vmatprep.subr.bf16.mxu1 %v3101_v41  ;;  %v3139_v16 = vcombine.high %v1782_v10, %v1786_v11  ;;  %v3138_v23 = vcombine.low %v1782_v10, %v1786_v11  ;;  %v3605_v38 = vld [vmem:[%s4512_s19 + $0x10] sm:$0xff]  }
 0xa3b   : > { %2234 = vmatprep.mubr.bf16.mxu0 %v4055_v5  ;;  %2277 = vmatprep.mubr.bf16.mxu1 %v4055_v5  ;;  %v3116_v5 = vcombine.low %v1759_v53, %v1763_v54  ;;  %v3606_v41 = vld [vmem:[%s4512_s19 + $0x90] sm:$0xff]   ;;  %v3617_v53 = vld [vmem:[%s4512_s19 + $0x28] sm:$0xff]  }
 0xa3c   : > { %v3618_v54 = vld [vmem:[%s4512_s19 + $0xa8] sm:$0xff]  }
 0xa3d   : > { %2205 = vmatpush1.bf16.msra.mxu0 %v3098_v37  ;;  %2248 = vmatpush1.bf16.msra.mxu1 %v3100_v48  ;;  %v3611_v37 = vld [vmem:[%s4512_s19 + $0x60] sm:$0xff]  }
 0xa3e   : > { %2206 = vmatprep.subr.bf16.mxu0 %v3107_v49  ;;  %2249 = vmatprep.subr.bf16.mxu1 %v3109_v50  ;;  %v3612_v48 = vld [vmem:[%s4512_s19 + $0xe0] sm:$0xff]  }
 0xa3f   : > { %v3613_v49 = vld [vmem:[%s4512_s19 + $0x20] sm:$0xff]  }
 0xa40   : > { %v3614_v50 = vld [vmem:[%s4512_s19 + $0xa0] sm:$0xff]  }
 0xa41   : > { %2207 = vmatpush1.bf16.msra.mxu0 %v3106_v55  ;;  %2250 = vmatpush1.bf16.msra.mxu1 %v3108_v56  ;;  %v3619_v55 = vld [vmem:[%s4512_s19 + $0x70] sm:$0xff]  }
 0xa42   : > { %2208 = vmatprep.subr.bf16.mxu0 %v3115_v47  ;;  %2251 = vmatprep.subr.bf16.mxu1 %v3117_v57  ;;  %v3620_v56 = vld [vmem:[%s4512_s19 + $0xf0] sm:$0xff]  }
 0xa43   : > { %v3621_v47 = vld [vmem:[%s4512_s19 + $0x30] sm:$0xff]  }
 0xa44   : > { %v3622_v57 = vld [vmem:[%s4512_s19 + $0xb0] sm:$0xff]  }
 0xa45   : > { %2209 = vmatpush1.bf16.msra.mxu0 %v3114_v62  ;;  %2252 = vmatpush1.bf16.msra.mxu1 %v3116_v5 }
 0xa46   : > { %2210 = vmatprep.subr.bf16.mxu0 %v3123_v63  ;;  %2253 = vmatprep.subr.bf16.mxu1 %v3125_v0 }
 0xa49   : > { %2211 = vmatpush1.bf16.msra.mxu0 %v3122_v6  ;;  %2254 = vmatpush1.bf16.msra.mxu1 %v3124_v7 }
 0xa4a   : > { %2212 = vmatprep.subr.bf16.mxu0 %v3131_v8  ;;  %2255 = vmatprep.subr.bf16.mxu1 %v3133_v9 }
 0xa4d   : > { %2213 = vmatpush1.bf16.msra.mxu0 %v3130_v14  ;;  %2256 = vmatpush1.bf16.msra.mxu1 %v3132_v15 }
 0xa4e   : > { %2214 = vmatprep.subr.bf16.mxu0 %v3139_v16  ;;  %2257 = vmatprep.subr.bf16.mxu1 %v3141_v17 }
 0xa51   : > { %2215 = vmatpush1.bf16.msra.mxu0 %v3138_v23  ;;  %2258 = vmatpush1.bf16.msra.mxu1 %v3140_v24 }
 0xa52   : > { %2216 = vmatprep.subr.bf16.mxu0 %v3147_v26  ;;  %2259 = vmatprep.subr.bf16.mxu1 %v3149_v27 }
 0xa55   : > { %2217 = vmatpush1.bf16.msra.mxu0 %v3146_v43  ;;  %2260 = vmatpush1.bf16.msra.mxu1 %v3148_v28 }
 0xa56   : > { %3243 = vmatprep.subr.bf16.mxu0 %v3595_v29  ;;  %3265 = vmatprep.subr.bf16.mxu1 %v3596_v31 }
 0xa58   : > { %2235 = vmatmul.mubr.bf16.vlgmr.msra.gmra.mrb[20].mxu0 %v4770_v33  ;;  %2278 = vmatmul.mubr.bf16.vlgmr.msra.gmra.mrb[20].mxu1 %v4770_v33  ;;  %v3604_v33 = vld [vmem:[%s4512_s19 + $0xd0] sm:$0xff]  }
 0xa59   : > { %3244 = vmatpush3.bf16.msra.mxu0 %v3597_v32  ;;  %3266 = vmatpush3.bf16.msra.mxu1 %v3598_v44 }
 0xa5a   : > { %3245 = vmatprep.subr.bf16.mxu0 %v3599_v35  ;;  %3267 = vmatprep.subr.bf16.mxu1 %v3600_v34 }
 0xa5d   : > { %3246 = vmatpush3.bf16.msra.mxu0 %v3601_v36  ;;  %3268 = vmatpush3.bf16.msra.mxu1 %v3602_v39 }
 0xa5e   : > { %3247 = vmatprep.subr.bf16.mxu0 %v3603_v40  ;;  %3269 = vmatprep.subr.bf16.mxu1 %v3604_v33 }
 0xa61   : > { %3248 = vmatpush3.bf16.msra.mxu0 %v3605_v38  ;;  %3270 = vmatpush3.bf16.msra.mxu1 %v3606_v41 }
 0xa62   : > { %3249 = vmatprep.subr.bf16.mxu0 %v3607_v42  ;;  %3271 = vmatprep.subr.bf16.mxu1 %v3608_v45 }
 0xa65   : > { %3250 = vmatpush3.bf16.msra.mxu0 %v3609_v46  ;;  %3272 = vmatpush3.bf16.msra.mxu1 %v3610_v30 }
 0xa66   : > { %3251 = vmatprep.subr.bf16.mxu0 %v3611_v37  ;;  %3273 = vmatprep.subr.bf16.mxu1 %v3612_v48 }
 0xa69   : > { %3252 = vmatpush3.bf16.msra.mxu0 %v3613_v49  ;;  %3274 = vmatpush3.bf16.msra.mxu1 %v3614_v50 }
 0xa6a   : > { %3253 = vmatprep.subr.bf16.mxu0 %v3615_v51  ;;  %3275 = vmatprep.subr.bf16.mxu1 %v3616_v52 }
 0xa6d   : > { %3254 = vmatpush3.bf16.msra.mxu0 %v3617_v53  ;;  %3276 = vmatpush3.bf16.msra.mxu1 %v3618_v54 }
 0xa6e   : > { %3255 = vmatprep.subr.bf16.mxu0 %v3619_v55  ;;  %3277 = vmatprep.subr.bf16.mxu1 %v3620_v56 }
 0xa71   : > { %3256 = vmatpush3.bf16.msra.mxu0 %v3621_v47  ;;  %3278 = vmatpush3.bf16.msra.mxu1 %v3622_v57 }
 0xa72   : > { %3257 = vmatprep.subr.bf16.mxu0 %v3623_v58  ;;  %3279 = vmatprep.subr.bf16.mxu1 %v3624_v59 }
 0xa75   : > { %3258 = vmatpush3.bf16.msra.mxu0 %v3625_v60  ;;  %3280 = vmatpush3.bf16.msra.mxu1 %v3626_v61 }
 0xb0b   : > { %v2150_v62 = vpop.f32.mrb[16].mxu0  ;;  %v2193_v5 = vpop.f32.mrb[16].mxu1 }
 0xb0c   : > { %v3150_v63 = vmul.f32 -1.442695, %v2150_v62  ;;  %v3152_v0 = vmul.f32 -1.442695, %v2193_v5  ;;  %v2152_v1 = vpop.f32.mrb[17].mxu0  ;;  %v2195_v2 = vpop.f32.mrb[17].mxu1 }
 0xb0d   : > { %v3151_v3 = vmul.f32 -1.442695, %v2152_v1  ;;  %v3153_v4 = vmul.f32 -1.442695, %v2195_v2  ;;  %v2154_v6 = vpop.f32.mrb[18].mxu0  ;;  %v2197_v7 = vpop.f32.mrb[18].mxu1 }
 0xb0e   : > { %3651 = vpow2.f32 %v3150_v63  ;;  %v3154_v8 = vmul.f32 -1.442695, %v2154_v6  ;;  %v2156_v9 = vpop.f32.mrb[19].mxu0  ;;  %v2199_v10 = vpop.f32.mrb[19].mxu1  ;;  %v3156_v11 = vmul.f32 -1.442695, %v2197_v7 }
 0xb0f   : > { %3653 = vpow2.f32 %v3152_v0  ;;  %v3155_v12 = vmul.f32 -1.442695, %v2156_v9  ;;  %v3157_v13 = vmul.f32 -1.442695, %v2199_v10 }
 0xb10   : > { %3655 = vpow2.f32 %v3151_v3 }
 0xb11   : > { %3657 = vpow2.f32 %v3153_v4 }
 0xb12   : > { %3659 = vpow2.f32 %v3154_v8 }
 0xb13   : > { %3661 = vpow2.f32 %v3156_v11 }
 0xb14   : > { %3663 = vpow2.f32 %v3155_v12 }
 0xb15   : > { %3665 = vpow2.f32 %v3157_v13 }
 0xb18   : > { %v3652_v14 = vpop.eup %3651 }
 0xb19   : > { %v3654_v15 = vpop.eup %3653  ;;  %v2312_v16 = vadd.f32 1.0, %v3652_v14 }
 0xb1a   : > { %v3656_v17 = vpop.eup %3655  ;;  %v2314_v18 = vadd.f32 1.0, %v3654_v15 }
 0xb1b   : > { %v3658_v19 = vpop.eup %3657  ;;  %3667 = vrcp.f32 %v2312_v16  ;;  %v2313_v20 = vadd.f32 1.0, %v3656_v17 }
 0xb1c   : > { %v3660_v22 = vpop.eup %3659  ;;  %3669 = vrcp.f32 %v2314_v18  ;;  %v2315_v23 = vadd.f32 1.0, %v3658_v19 }
 0xb1d   : > { %v3662_v24 = vpop.eup %3661  ;;  %3671 = vrcp.f32 %v2313_v20  ;;  %v2316_v26 = vadd.f32 1.0, %v3660_v22  ;;  %v3683_v20 = vld [vmem:[#allocation12] sm:$0xff] (!%p3190_p5)   ;;  %v4060_v22 = vmov (!%p3190_p5), 0.0  }
 0xb1e   : > { %v3664_v27 = vpop.eup %3663  ;;  %3673 = vrcp.f32 %v2315_v23  ;;  %v2318_v43 = vadd.f32 1.0, %v3662_v24  ;;  %3384 = vmatprep.subr.bf16.mxu0 (!%p3190_p5), %v4060_v22  ;;  %v3684_v23 = vld [vmem:[#allocation12 + $0x8] sm:$0xff] (!%p3190_p5)   ;;  %v3685_v24 = vld [vmem:[#allocation12 + $0x10] sm:$0xff] (!%p3190_p5)  }
 0xb1f   : > { %v3666_v28 = vpop.eup %3665  ;;  %3675 = vrcp.f32 %v2316_v26  ;;  %v2317_v29 = vadd.f32 1.0, %v3664_v27  ;;  %v3688_v26 = vld [vmem:[#allocation12 + $0x28] sm:$0xff] (!%p3190_p5)   ;;  %v3689_v27 = vld [vmem:[#allocation12 + $0x30] sm:$0xff] (!%p3190_p5)  }
 0xb20   : > { %3677 = vrcp.f32 %v2318_v43  ;;  %v2319_v31 = vadd.f32 1.0, %v3666_v28  ;;  %v3690_v43 = vld [vmem:[#allocation12 + $0x38] sm:$0xff] (!%p3190_p5)  }
 0xb21   : > { %3679 = vrcp.f32 %v2317_v29  ;;  %v3191_v29 = vld [vmem:[%s4966_s29] ss:$0 sm:$0xff] (!%p3190_p5) }
 0xb22   : > { %3681 = vrcp.f32 %v2319_v31 }
 0xb25   : > { %v3668_v32 = vpop.eup %3667 }
 0xb26   : > { %v3670_v44 = vpop.eup %3669  ;;  %v2336_v40 = vmul.f32 %v3668_v32, %v2150_v62 }
 0xb27   : > { %v3672_v35 = vpop.eup %3671  ;;  %v2338_v33 = vmul.f32 %v3670_v44, %v2193_v5 }
 0xb28   : > { %v3674_v34 = vpop.eup %3673  ;;  %v2337_v41 = vmul.f32 %v3672_v35, %v2152_v1 }
 0xb29   : > { %v3676_v36 = vpop.eup %3675  ;;  %v2339_v42 = vmul.f32 %v3674_v34, %v2195_v2 }
 0xb2a   : > { %v3678_v39 = vpop.eup %3677  ;;  %v2340_v37 = vmul.f32 %v3676_v36, %v2154_v6 }
 0xb2b   : > { %v3680_v38 = vpop.eup %3679  ;;  %v2236_v45 = vpop.f32.mrb[20].mxu0  ;;  %v2342_v48 = vmul.f32 %v3678_v39, %v2197_v7 }
 0xb2c   : > { %v2279_v46 = vpop.f32.mrb[20].mxu1  ;;  %v3682_v30 = vpop.eup %3681  ;;  %v2344_v49 = vmul.f32 %v2336_v40, %v2236_v45  ;;  %v2341_v53 = vmul.f32 %v3680_v38, %v2156_v9 }
 0xb2d   : > { %v2346_v50 = vmul.f32 %v2338_v33, %v2279_v46  ;;  %v2238_v51 = vpop.f32.mrb[21].mxu0  ;;  %v2281_v52 = vpop.f32.mrb[21].mxu1  ;;  %v2343_v54 = vmul.f32 %v3682_v30, %v2199_v10 }
 0xb2e   : > { %v2345_v55 = vmul.f32 %v2337_v41, %v2238_v51  ;;  %v2347_v56 = vmul.f32 %v2339_v42, %v2281_v52  ;;  %v2240_v47 = vpop.f32.mrb[22].mxu0  ;;  %v2283_v57 = vpop.f32.mrb[22].mxu1 }
 0xb2f   : > { %v2348_v58 = vmul.f32 %v2340_v37, %v2240_v47  ;;  %v2350_v59 = vmul.f32 %v2342_v48, %v2283_v57  ;;  %v2242_v60 = vpop.f32.mrb[23].mxu0  ;;  %v2285_v61 = vpop.f32.mrb[23].mxu1 }
 0xb30   : > { %v2349_v62 = vmul.f32 %v2341_v53, %v2242_v60  ;;  %v2351_v5 = vmul.f32 %v2343_v54, %v2285_v61 }
 0xb31   : > { %v2352_v63 = vpack.c.bf16 %v2348_v58, %v2344_v49  ;;  %v2354_v0 = vpack.c.bf16 %v2350_v59, %v2346_v50 }
 0xb32   : > { %v2353_v1 = vpack.c.bf16 %v2349_v62, %v2345_v55  ;;  %v2355_v2 = vpack.c.bf16 %v2351_v5, %v2347_v56 }
 0xb34   : > { %2644 = vmatprep.mubr.bf16.mxu0 %v2353_v1  ;;  %2685 = vmatprep.mubr.bf16.mxu1 %v2355_v2 }
 0xb35   : > { %2645 = vmatmul.mubr.bf16.vlgmr.msra.gmra.mrb[24].mxu0 %v2352_v63  ;;  %2686 = vmatmul.mubr.bf16.vlgmr.msra.gmra.mrb[24].mxu1 %v2354_v0 }
 0xb36   : > { %3385 = vmatpush3.bf16.msra.mxu0 (!%p3190_p5), %v3683_v20  ;;  %3400 = vmatprep.mubr.msk.bf16.mxu0 (!%p3190_p5), %vm4061_vm8, %v4060_v22 }
 0xb37   : > { %3386 = vmatprep.subr.bf16.mxu0 (!%p3190_p5), %v4060_v22 }
 0xb3a   : > { %3387 = vmatpush3.bf16.msra.mxu0 (!%p3190_p5), %v3684_v23 }
 0xb3b   : > { %3388 = vmatprep.subr.bf16.mxu0 (!%p3190_p5), %v4060_v22 }
 0xb3e   : > { %3389 = vmatpush3.bf16.msra.mxu0 (!%p3190_p5), %v3685_v24 }
 0xb3f   : > { %3390 = vmatprep.subr.bf16.mxu0 (!%p3190_p5), %v4060_v22 }
 0xc08   : > { %v3259_v3 = vpop.f32.mrb[24].mxu0  ;;  %v3281_v4 = vpop.f32.mrb[24].mxu1 }
 0xc09   : > { %v3260_v6 = vpop.f32.mrb[25].mxu0  ;;  %v3282_v7 = vpop.f32.mrb[25].mxu1 }
 0xc0a   : > { %v3261_v8 = vadd.f32 %v3260_v6, %v3259_v3  ;;  %v3283_v9 = vadd.f32 %v3282_v7, %v3281_v4  ;;  %v3262_v10 = vpop.f32.mrb[26].mxu0  ;;  %v3284_v11 = vpop.f32.mrb[26].mxu1 }
 0xc0b   : > { %v3263_v12 = vpop.f32.mrb[27].mxu0  ;;  %v3285_v13 = vpop.f32.mrb[27].mxu1 }
 0xc0c   : > { %v2688_v14 = vadd.f32 %v3283_v9, %v3261_v8  ;;  %v3264_v15 = vadd.f32 %v3263_v12, %v3262_v10  ;;  %v3286_v16 = vadd.f32 %v3285_v13, %v3284_v11  ;;  %2701 = sbr.rel (%p3190_p5) target bundleno = 3323 (0xcfb), region = 128 }
 0xc0e   : > { %v2694_v17 = vadd.f32 %v2688_v14, %v4722_v21  ;;  %v2691_v18 = vadd.f32 %v3286_v16, %v3264_v15  ;;  %v3686_v21 = vld [vmem:[#allocation12 + $0x18] sm:$0xff] (!%p3190_p5)  }
 0xc0f   : > { %3391 = vmatpush3.bf16.msra.mxu0 (!%p3190_p5), %v3686_v21 }
 0xc10   : > { %2696 = vst [vmem:[#allocation2] sm:$0xff] %v2694_v17  ;;  %v2695_v19 = vadd.f32 %v2691_v18, %v4725_v25  ;;  %v3687_v25 = vld [vmem:[#allocation12 + $0x20] sm:$0xff] (!%p3190_p5)   ;;  %3392 = vmatprep.subr.bf16.mxu0 (!%p3190_p5), %v4060_v22 }
 0xc12   : > { %2697 = vst [vmem:[#allocation2 + $0x8] sm:$0xff] %v2695_v19  ;;  %v2702_v28 = vpack.c.bf16 (!%p3190_p5), %v2695_v19, %v2694_v17 }
 0xc13   : > { %3393 = vmatpush3.bf16.msra.mxu0 %v3687_v25 }
 0xc14   : > { %3394 = vmatprep.subr.bf16.mxu0 %v4060_v22 }
 0xc17   : > { %3395 = vmatpush3.bf16.msra.mxu0 %v3688_v26 }
 0xc18   : > { %3396 = vmatprep.subr.bf16.mxu0 %v4060_v22 }
 0xc1b   : > { %3397 = vmatpush3.bf16.msra.mxu0 %v3689_v27 }
 0xc1c   : > { %3398 = vmatprep.subr.bf16.mxu0 %v4060_v22 }
 0xc1f   : > { %3399 = vmatpush3.bf16.msra.mxu0 %v3690_v43 }
 0xc22   : > { %3401 = vmatmul.mubr.bf16.vlgmr.msra.gmra.mrb[0].mxu0 %v2702_v28 }
 0xcf5   : > { %v2808_v31 = vpop.f32.mrb[0].mxu0 }
 0xcf6   : > { %v2809_v32 = vadd.f32 %v3191_v29, %v2808_v31  ;;  %v3402_v44 = vpop.f32.mrb[1].mxu0 }
 0xcf7   : > { %v2811_v35 = vpop.f32.mrb[2].mxu0 }
 0xcf8   : > { %2815 = vst [vmem:[#allocation19] sm:$0xff] %v2809_v32  ;;  %v2812_v34 = vadd.f32 %v3191_v29, %v2811_v35  ;;  %v3403_v36 = vpop.f32.mrb[3].mxu0 }
 0xcfa   : > { %2816 = vst [vmem:[#allocation19 + $0x8] sm:$0xff] %v2812_v34 }
 0xcfb PF: > { %p3479_p12 = scmp.eq.s32.totalorder %s4169_s25, 1  ;;  %s4062_s19 = smov [#allocation19]  }
 0xcfc   : > { %s2823_s6 = sshll.u32 %s4062_s19, 4  ;;  %s2824_s6 = int_to_ptr.vmem [resolvable:$true] %s2823_s6 }
 0xcfd   : > { %s3951_s28 = scalar_lea.vmem %s2824_s6, 256  ;;  %p3958_p0 = scmp.lt.s32.totalorder %s2824_s6, %s2824_s6 }
 0xcfe   : > { %p3952_p3 = scmp.ne.s32.totalorder %s2824_s6, %s3951_s28  ;;  %p3959_p8 = scmp.lt.s32.totalorder %s3951_s28, %s3951_s28 }
 0xd00   : > { %p3953_p7 = pnand %p3952_p3, %p3479_p12  ;;  %p3960_p10 = por %p3959_p8, %p3958_p0 }
 0xd02   : > { %p3954_p6 = pneg %p3953_p7 }
 0xd04   : > { %p3961_p9 = pnand %p3960_p10, %p3954_p6 }
 0xd06   : > { %3964 = shalt.err (!%p3961_p9)
}
 0xd07   : > { %s4967_s2 = sld [smem:[#allocation42_spill]] }
 0xd0d   : > { %s3965_s12 = scalar_lea.hbm %s4967_s2, 256 }
 0xd0e   : > { %p3966_p11 = scmp.ne.s32.totalorder %s4967_s2, %s3965_s12  ;;  %p3971_p13 = scmp.lt.u32.totalorder %s3965_s12, %s4967_s2 }
 0xd10   : > { %p3967_p2 = pnand %p3966_p11, %p3479_p12 }
 0xd12   : > { %p3968_p1 = pneg %p3967_p2 }
 0xd14   : > { %p3973_p4 = pnand %p3971_p13, %p3968_p1 }
 0xd16   : > { %3976 = shalt.err (!%p3973_p4)
}
 0xd17   : > { %s4063_s24 = smov 128   ;;  %s4064_s16 = smov 8  }
 0xd18   : > { %3436 = dma.vmem_to_hbm [thread:$0]  (%p3479_p12), %s2824_s6, 256, %s4967_s2, [#allocation6], %s4063_s24, %s4063_s24, %s4064_s16  }
 0xd19   : > { %4014 = dma.done.wait (%p3479_p12), [#allocation6], 256  }
 0xd1a   : > { %4016 = vsyncadd (%p3479_p12), [#allocation6], 4294967040 }
 0xd1b PF: > { %s4968_s24 = sld [smem:[#allocation29_spill]]  ;;  %s4969_s21 = sld [smem:[#allocation26_spill]] }
 0xd1c   : > { %s4970_s22 = sld [smem:[#allocation27_spill]]  ;;  %s4971_s23 = sld [smem:[#allocation30_spill]] }
 0xd21   : > { %p33_p5 = scmp.ge.s32.totalorder %s4968_s24, 4  }
 0xd23   :  { %35 = sbr.rel (!%p33_p5) target bundleno = 22 (0x16), region = 191 }
 0xd2a   :  { %2839 = vsyncpa [#allocation5], 1 }
 0xd2b   :  { %2841 = vsyncpa [#allocation5 + $0x1], 1 }
 0xd2c   :  { %2842 = vsyncpa [#allocation8], 1 }
 0xd2d   :  { %2843 = vsyncpa [#allocation11], 1 }
 0xd2e   :  { %2844 = vsyncpa [#allocation14], 1 }
 0xd2f   :  { %2846 = vsyncpa [#allocation14 + $0x1], 1 }
 0xd30   :  { %2847 = vsyncpa [#allocation17], 1 }
 0xd31   :  { %2849 = vsyncpa [#allocation17 + $0x1], 1 }
 0xd32   :  { %2850 = vsyncpa [#allocation6], 1 }
 0xd33   :  { %2852 = vsyncpa [#allocation6 + $0x1], 1 }

</bundles_post_ra>
